<compile_context>
chip_gen: v7x
topology: tpu7x:2x2x1
jax: 0.10.0
libtpu: 0.0.40
codegen_flags: <defaults>
</compile_context>

<pallas_src>
import functools

import jax
import jax.numpy as jnp
from jax.experimental import pallas as pl
from jax.experimental.pallas import tpu as pltpu


def _round_up(x, m):
    return ((x + m - 1) // m) * m


def _vq_kernel(x_ref, et_ref, e_ref, e2h_ref, q_ref, loss_ref, *,
               tm, rows_valid_last, mask_last):
    """One grid step: quantize a (tm, Dp) row tile against the full codebook.

    x_ref:    (tm, Dp)    input rows, native dtype (bf16 stays bf16 -> bf16 MXU)
    et_ref:   (Dp, Kp)    pre-transposed codebook in x's dtype (score matmul)
    e_ref:    (Kp, Dp)    codebook in f32 (exact gather of the winning rows)
    e2h_ref:  (1, Kp)     0.5*||e_k||^2 (f32), huge on padded codebook rows
    q_ref:    (tm, Dp)    quantized rows (native dtype, output)
    loss_ref: (1, 8, 128) per-tile sum of squared (q - x), broadcast over the
                          block so the store stays lane-dense / unmasked.
    """
    x = x_ref[...]                                                   # native dtype

    # argmin_k ||x - e_k||^2 == argmin_k (0.5*||e_k||^2 - x . e_k); the
    # row-constant ||x||^2 term is dropped.  Codebook arrives pre-transposed,
    # so there is no per-step relayout.
    xe = jnp.dot(x, et_ref[...], preferred_element_type=jnp.float32)   # (tm, Kp)
    score = e2h_ref[...] - xe                                          # (tm, Kp)

    kp = score.shape[1]
    min_val = jnp.min(score, axis=1, keepdims=True)                    # (tm, 1)
    # TODO(synk): hoisting this iota into a persistent scratch is unsafe with
    # "parallel" grid semantics (a second core never runs grid step 0), so it
    # is regenerated per step (~tm/8 vregs).
    col = jax.lax.broadcasted_iota(jnp.int32, score.shape, 1)          # (tm, Kp)
    idx = jnp.min(jnp.where(score <= min_val, col, kp), axis=1)        # (tm,)

    # Gather the winning codebook rows via a one-hot matmul (no TPU gather).
    # Kept in f32 so quantized values are bit-exact codebook rows.
    onehot = (col == idx[:, None]).astype(jnp.float32)                 # (tm, Kp)
    q = jnp.dot(onehot, e_ref[...], preferred_element_type=jnp.float32)  # (tm, Dp)
    q_ref[...] = q.astype(q_ref.dtype)

    diff = q - x.astype(jnp.float32)
    per_row = jnp.sum(diff * diff, axis=1, keepdims=True)              # (tm, 1)
    loss_ref[...] = jnp.full(loss_ref.shape, jnp.sum(per_row), jnp.float32)

    if mask_last:
        # Only the last tile contains padded rows; all other steps skip this.
        @pl.when(pl.program_id(0) == pl.num_programs(0) - 1)
        def _():
            rows = jax.lax.broadcasted_iota(jnp.int32, (tm, 1), 0)
            masked = jnp.where(rows < rows_valid_last, per_row, 0.0)
            loss_ref[...] = jnp.full(loss_ref.shape, jnp.sum(masked),
                                     jnp.float32)

    # TODO(synk): for very large codebooks (K >= ~2048) replace the single-shot
    # (tm, Kp) score/onehot path with a fori_loop over K chunks carrying a
    # running (min, argmin), gathering q once at the end.


def _vmem_capacity_bytes():
    """Physical per-core VMEM (generation-aware), conservative fallback."""
    try:
        cap = int(pltpu.get_tpu_info().vmem_capacity_bytes)
        if cap > 0:
            return cap
    except Exception:
        pass
    return 64 * 1024 * 1024          # v7x per-TensorCore size (most restrictive)


def _derive_row_tile(M, Dp, Kp, itemsize, vmem_cap, *, tm_max=2048):
    """Largest row tile (multiple of 8) within the per-generation VMEM budget,
    capped so the grid keeps >= 4 steps when there is enough work (megacore
    sharding on v7x + DMA/compute overlap)."""
    budget = min(32 * 1024 * 1024,
                 max(8 * 1024 * 1024, (vmem_cap - 16 * 1024 * 1024) // 2))
    fixed = 2 * Kp * Dp * (4 + itemsize) + 2 * Kp * 4 + 2 * 8 * 128 * 4
    per_row = (2 * Dp * itemsize          # x tile, double-buffered
               + 2 * Dp * itemsize        # q tile, double-buffered
               + 3 * Kp * 4               # score / onehot / iota working set
               + 3 * Dp * 4)              # f32 q / diff / upcast copies
    tm = (budget - fixed) // max(per_row, 1)
    tm = int(min(tm, tm_max, max(M, 8)))
    if M >= 4 * 128:                      # keep the grid >= 4 steps
        tm = min(tm, max(128, (M // 4 // 8) * 8))
    return max(8, (tm // 8) * 8)


def vector_quantizer_forward(x_nchw, embedding, beta, *, tm=None):
    """Pallas equivalent of VectorQuantizer.forward (forward values only).

    x_nchw:    (N, C, H, W) with C == embedding_dim (f32 or bf16)
    embedding: (K, D) codebook
    Returns (loss, quantized_nchw).
    """
    # TODO(synk): gradients (detach / straight-through estimator) need a
    # custom_vjp; this implements the forward value only.
    N, C, H, W = x_nchw.shape
    D = C
    K = embedding.shape[0]

    # TODO(synk): if surrounding layers can produce/consume NHWC these two
    # transposes are extra full-tensor HBM sweeps that can be skipped (or
    # fused into the pallas_call input via allow_input_fusion).
    x_nhwc = jnp.transpose(x_nchw, (0, 2, 3, 1))
    xf = x_nhwc.reshape(-1, D)                       # (M, D), native dtype
    M = xf.shape[0]
    x_dtype = xf.dtype
    itemsize = jnp.dtype(x_dtype).itemsize

    # --- codebook prep (hoisted out of the grid) -----------------------------
    Kp = _round_up(K, 128)
    Dp = _round_up(D, 128)
    if Dp > 2 * D:       # lane-padding tiny D would blow up x/q HBM traffic
        Dp = D
    e_f32 = embedding.astype(jnp.float32)
    e2_half = 0.5 * jnp.sum(e_f32 * e_f32, axis=1)                      # (K,)
    e2h = jnp.full((1, Kp), 1e30, jnp.float32).at[0, :K].set(e2_half)
    e_pad = jnp.zeros((Kp, Dp), jnp.float32).at[:K, :D].set(e_f32)      # gather
    e_t = jnp.transpose(e_pad).astype(x_dtype)       # (Dp, Kp), score matmul

    # --- row tiling -----------------------------------------------------------
    vmem_cap = _vmem_capacity_bytes()
    if tm is None:
        tm = _derive_row_tile(M, Dp, Kp, itemsize, vmem_cap)
    tm = max(8, (int(tm) // 8) * 8)
    grid = pl.cdiv(M, tm)
    M_pad = grid * tm
    if M_pad != M or Dp != D:
        xf = jnp.pad(xf, ((0, M_pad - M), (0, Dp - D)))
    mask_last = M_pad != M
    rows_valid_last = M - (grid - 1) * tm

    kernel = functools.partial(_vq_kernel, tm=tm,
                               rows_valid_last=rows_valid_last,
                               mask_last=mask_last)

    # Generation-aware VMEM limit: real estimate with margin, capped at
    # (physical VMEM - 16 MiB) so v7x (64 MiB/core) keeps compiler headroom.
    est = (4 * tm * Dp * itemsize               # x + q tiles, double-buffered
           + 2 * Kp * Dp * (4 + itemsize)       # codebook + transposed copy
           + 2 * Kp * 4 + 2 * 8 * 128 * 4
           + (2 << 20))
    vmem_limit = int(min(vmem_cap - 16 * 1024 * 1024,
                         max(32 * 1024 * 1024, 2 * est)))

    def _call(single_buffer_codebook):
        def const_spec(shape):
            kw = ({"pipeline_mode": pl.Buffered(1)}
                  if single_buffer_codebook else {})
            return pl.BlockSpec(shape, lambda i: (0, 0), **kw)

        return pl.pallas_call(
            kernel,
            out_shape=(
                jax.ShapeDtypeStruct((M_pad, Dp), x_dtype),        # quantized
                jax.ShapeDtypeStruct((grid, 8, 128), jnp.float32),  # tile loss
            ),
            grid_spec=pltpu.PrefetchScalarGridSpec(
                num_scalar_prefetch=0,
                grid=(grid,),
                in_specs=[
                    pl.BlockSpec((tm, Dp), lambda i: (i, 0)),   # x tile
                    const_spec((Dp, Kp)),                       # codebook^T
                    const_spec((Kp, Dp)),                       # codebook (f32)
                    const_spec((1, Kp)),                        # 0.5*||e||^2
                ],
                out_specs=[
                    pl.BlockSpec((tm, Dp), lambda i: (i, 0)),       # quantized
                    pl.BlockSpec((1, 8, 128), lambda i: (i, 0, 0)),  # tile loss
                ],
            ),
            compiler_params=pltpu.CompilerParams(
                dimension_semantics=("parallel",),   # independent tiles -> megacore
                vmem_limit_bytes=vmem_limit,
            ),
        )(xf, e_t, e_pad, e2h)

    try:
        # Constant-index codebook blocks do not need double buffering.
        q_flat, loss_tiles = _call(True)
    except Exception:
        q_flat, loss_tiles = _call(False)

    # mse over valid rows / original D columns only (padded rows masked
    # in-kernel; padded columns are zero on both q and x).
    mse = jnp.sum(loss_tiles[:, 0, 0]) / jnp.float32(M * D)
    # e_latent_loss = beta*mse, q_latent_loss = mse (detach only affects grads)
    loss = (1.0 + beta) * mse

    # Straight-through: forward value of inputs + (q - inputs).detach() == q
    q_nhwc = q_flat[:M, :D].reshape(N, H, W, D)
    q_nchw = jnp.transpose(q_nhwc, (0, 3, 1, 2)).astype(x_nchw.dtype)
    return loss, q_nchw


def _reference_forward(x_nchw, embedding, beta):
    """Pure-JAX reference mirroring the PyTorch code (forward values)."""
    N, C, H, W = x_nchw.shape
    D = C
    x = jnp.transpose(x_nchw, (0, 2, 3, 1)).reshape(-1, D).astype(jnp.float32)
    e = embedding.astype(jnp.float32)
    dist = (jnp.sum(x ** 2, axis=1, keepdims=True)
            + jnp.sum(e ** 2, axis=1)
            - 2.0 * x @ e.T)
    idx = jnp.argmin(dist, axis=1)
    q = e[idx]
    mse = jnp.mean((q - x) ** 2)
    loss = (1.0 + beta) * mse
    q_nchw = jnp.transpose(q.reshape(N, H, W, D), (0, 3, 1, 2))
    return loss, q_nchw


if __name__ == "__main__":
    beta = 0.25
    key = jax.random.PRNGKey(0)
    k_emb, k_x1, k_x2, k_emb2, k_x3, k_x4 = jax.random.split(key, 6)

    # --- test 1: f32, D=4, K=8 (module's example config) --------------------
    K1, D1 = 8, 4
    emb1 = jax.random.uniform(k_emb, (K1, D1), minval=-1.0 / K1,
                              maxval=1.0 / K1, dtype=jnp.float32)
    x1 = jax.random.normal(k_x1, (2, D1, 16, 16), dtype=jnp.float32)
    loss1, q1 = jax.block_until_ready(vector_quantizer_forward(x1, emb1, beta))
    rl1, rq1 = _reference_forward(x1, emb1, beta)
    assert q1.shape == x1.shape
    assert jnp.allclose(loss1, rl1, atol=1e-5, rtol=1e-5)
    assert jnp.allclose(q1, rq1, atol=1e-5, rtol=1e-5)

    # --- test 2: ragged M (padding + last-tile-only masking), multi-tile ----
    x2 = jax.random.normal(k_x2, (2, D1, 16, 10), dtype=jnp.float32)
    loss2, q2 = jax.block_until_ready(
        vector_quantizer_forward(x2, emb1, beta, tm=96))
    rl2, rq2 = _reference_forward(x2, emb1, beta)
    assert q2.shape == x2.shape
    assert jnp.allclose(loss2, rl2, atol=1e-5, rtol=1e-5)
    assert jnp.allclose(q2, rq2, atol=1e-5, rtol=1e-5)

    # --- test 3: D=64 -> lane-padded to 128, K=32 -> padded to 128 -----------
    K3, D3 = 32, 64
    emb3 = jax.random.uniform(k_emb2, (K3, D3), minval=-1.0 / K3,
                              maxval=1.0 / K3, dtype=jnp.float32)
    x3 = jax.random.normal(k_x3, (2, D3, 8, 8), dtype=jnp.float32)
    loss3, q3 = jax.block_until_ready(vector_quantizer_forward(x3, emb3, beta))
    rl3, rq3 = _reference_forward(x3, emb3, beta)
    assert q3.shape == x3.shape
    assert jnp.allclose(loss3, rl3, atol=1e-4, rtol=1e-4)
    # Tie-robust optimality check (exact index parity can flip on near-ties):
    # the kernel's chosen codeword must never be farther than the reference's.
    xr = jnp.transpose(x3, (0, 2, 3, 1)).reshape(-1, D3)
    dk = jnp.sum((xr - jnp.transpose(q3, (0, 2, 3, 1)).reshape(-1, D3)) ** 2, 1)
    dr = jnp.sum((xr - jnp.transpose(rq3, (0, 2, 3, 1)).reshape(-1, D3)) ** 2, 1)
    assert jnp.all(dk <= dr + 1e-3)

    # --- test 4: native bf16 activations (bf16 MXU path, no f32 upcast) ------
    x4 = jax.random.normal(k_x4, (2, D1, 16, 16),
                           dtype=jnp.float32).astype(jnp.bfloat16)
    loss4, q4 = jax.block_until_ready(vector_quantizer_forward(x4, emb1, beta))
    rl4, _ = _reference_forward(x4, emb1, beta)
    assert q4.shape == x4.shape and q4.dtype == jnp.bfloat16
    assert jnp.allclose(loss4, rl4, atol=5e-3, rtol=2e-2)

    print("KERNEL_OK")
</pallas_src>

<mosaic_0001>
module attributes {stable_mosaic.version = 11 : i64} {
  func.func @_vq_kernel(%arg0: i32, %arg1: memref<128x4xf32, #tpu.memory_space<vmem>>, %arg2: memref<4x128xf32, #tpu.memory_space<vmem>>, %arg3: memref<128x4xf32, #tpu.memory_space<vmem>>, %arg4: memref<1x128xf32, #tpu.memory_space<vmem>>, %arg5: memref<128x4xf32, #tpu.memory_space<vmem>>, %arg6: memref<1x8x128xf32, #tpu.memory_space<vmem>>) attributes {dimension_semantics = [#tpu.dimension_semantics<parallel>], iteration_bounds = array<i64: 4>, scalar_prefetch = 0 : i64, scratch_operands = 0 : i64, tpu.core_type = #tpu.core_type<tc>, window_params = [{transform_indices = @transform_0, window_bounds = array<i64: 128, 4>}, {pipeline_mode = #tpu.pipeline_mode<synchronous>, transform_indices = @transform_1, window_bounds = array<i64: 4, 128>}, {pipeline_mode = #tpu.pipeline_mode<synchronous>, transform_indices = @transform_2, window_bounds = array<i64: 128, 4>}, {pipeline_mode = #tpu.pipeline_mode<synchronous>, transform_indices = @transform_3, window_bounds = array<i64: 1, 128>}, {transform_indices = @transform_4, window_bounds = array<i64: 128, 4>}, {transform_indices = @transform_5, window_bounds = array<i64: 1, 8, 128>}]} {
    %c0 = arith.constant 0 : index
    %c0_0 = arith.constant 0 : index
    %0 = vector.load %arg1[%c0, %c0_0] : memref<128x4xf32, #tpu.memory_space<vmem>>, vector<128x4xf32>
    %c0_1 = arith.constant 0 : index
    %c0_2 = arith.constant 0 : index
    %1 = vector.load %arg2[%c0_1, %c0_2] : memref<4x128xf32, #tpu.memory_space<vmem>>, vector<4x128xf32>
    %cst = arith.constant dense<0.000000e+00> : vector<128x128xf32>
    %2 = tpu.matmul %0, %1, %cst {dimension_numbers = #tpu.dot_dimension_numbers<[1], [0], [0], [1], [0, 0, 1, 1], [], []>} : vector<128x4xf32>, vector<4x128xf32>, vector<128x128xf32> -> vector<128x128xf32>
    %c0_3 = arith.constant 0 : index
    %c0_4 = arith.constant 0 : index
    %3 = vector.load %arg4[%c0_3, %c0_4] : memref<1x128xf32, #tpu.memory_space<vmem>>, vector<1x128xf32>
    %4 = vector.broadcast %3 : vector<1x128xf32> to vector<128x128xf32>
    %5 = arith.subf %4, %2 : vector<128x128xf32>
    %cst_5 = arith.constant dense<0x7F800000> : vector<128xf32>
    %6 = vector.multi_reduction <minimumf>, %5, %cst_5 [1] : vector<128x128xf32> to vector<128xf32>
    %7 = vector.shape_cast %6 : vector<128xf32> to vector<128x1xf32>
    %8 = tpu.iota {dimensions = array<i32: 1>} : vector<128x128xi32>
    %9 = vector.broadcast %7 : vector<128x1xf32> to vector<128x128xf32>
    %10 = arith.cmpf ole, %5, %9 : vector<128x128xf32>
    %c128_i32 = arith.constant 128 : i32
    %11 = vector.broadcast %c128_i32 : i32 to vector<128x128xi32>
    %12 = arith.select %10, %8, %11 : vector<128x128xi1>, vector<128x128xi32>
    %cst_6 = arith.constant dense<2147483647> : vector<128xi32>
    %13 = vector.multi_reduction <minsi>, %12, %cst_6 [1] : vector<128x128xi32> to vector<128xi32>
    %14 = vector.shape_cast %13 : vector<128xi32> to vector<128x1xi32>
    %15 = vector.broadcast %14 : vector<128x1xi32> to vector<128x128xi32>
    %16 = arith.cmpi eq, %8, %15 : vector<128x128xi32>
    %17 = arith.extui %16 : vector<128x128xi1> to vector<128x128xi32>
    %18 = arith.sitofp %17 : vector<128x128xi32> to vector<128x128xf32>
    %c0_7 = arith.constant 0 : index
    %c0_8 = arith.constant 0 : index
    %19 = vector.load %arg3[%c0_7, %c0_8] : memref<128x4xf32, #tpu.memory_space<vmem>>, vector<128x4xf32>
    %cst_9 = arith.constant dense<0.000000e+00> : vector<128x4xf32>
    %20 = tpu.matmul %18, %19, %cst_9 {dimension_numbers = #tpu.dot_dimension_numbers<[1], [0], [0], [1], [0, 0, 1, 1], [], []>} : vector<128x128xf32>, vector<128x4xf32>, vector<128x4xf32> -> vector<128x4xf32>
    %c0_10 = arith.constant 0 : index
    %c0_11 = arith.constant 0 : index
    %21 = vector.load %arg5[%c0_10, %c0_11] : memref<128x4xf32, #tpu.memory_space<vmem>>, vector<128x4xf32>
    tpu.vector_store %arg5[%c0_10, %c0_11], %20 {strides = array<i32>} : memref<128x4xf32, #tpu.memory_space<vmem>>, vector<128x4xf32>,
    %22 = arith.subf %20, %0 : vector<128x4xf32>
    %23 = arith.mulf %22, %22 : vector<128x4xf32>
    %cst_12 = arith.constant dense<0.000000e+00> : vector<128xf32>
    %24 = vector.multi_reduction <add>, %23, %cst_12 [1] : vector<128x4xf32> to vector<128xf32>
    %25 = vector.shape_cast %24 : vector<128xf32> to vector<128x1xf32>
    %26 = vector.shape_cast %25 : vector<128x1xf32> to vector<1x128x1xf32>
    %cst_13 = arith.constant dense<0.000000e+00> : vector<1xf32>
    %27 = vector.multi_reduction <add>, %26, %cst_13 [1, 2] : vector<1x128x1xf32> to vector<1xf32>
    %28 = vector.shape_cast %27 : vector<1xf32> to vector<1x1x1xf32>
    %29 = vector.extract %28[0, 0, 0] : f32 from vector<1x1x1xf32>
    %30 = vector.broadcast %29 : f32 to vector<1x8x128xf32>
    %c0_14 = arith.constant 0 : index
    %c0_15 = arith.constant 0 : index
    %c0_16 = arith.constant 0 : index
    %31 = vector.load %arg6[%c0_14, %c0_15, %c0_16] : memref<1x8x128xf32, #tpu.memory_space<vmem>>, vector<1x8x128xf32>
    tpu.vector_store %arg6[%c0_14, %c0_15, %c0_16], %30 {strides = array<i32>} : memref<1x8x128xf32, #tpu.memory_space<vmem>>, vector<1x8x128xf32>,
    return
  }
  func.func @transform_0(%arg0: i32) -> (i32, i32) {
    %c0_i32 = arith.constant 0 : i32
    %c0_i32_0 = arith.constant 0 : i32
    return %arg0, %c0_i32 : i32, i32
  }
  func.func @transform_1(%arg0: i32) -> (i32, i32) {
    %c0_i32 = arith.constant 0 : i32
    %c0_i32_0 = arith.constant 0 : i32
    %c0_i32_1 = arith.constant 0 : i32
    return %c0_i32, %c0_i32_0 : i32, i32
  }
  func.func @transform_2(%arg0: i32) -> (i32, i32) {
    %c0_i32 = arith.constant 0 : i32
    %c0_i32_0 = arith.constant 0 : i32
    %c0_i32_1 = arith.constant 0 : i32
    return %c0_i32, %c0_i32_0 : i32, i32
  }
  func.func @transform_3(%arg0: i32) -> (i32, i32) {
    %c0_i32 = arith.constant 0 : i32
    %c0_i32_0 = arith.constant 0 : i32
    %c0_i32_1 = arith.constant 0 : i32
    return %c0_i32, %c0_i32_0 : i32, i32
  }
  func.func @transform_4(%arg0: i32) -> (i32, i32) {
    %c0_i32 = arith.constant 0 : i32
    %c0_i32_0 = arith.constant 0 : i32
    return %arg0, %c0_i32 : i32, i32
  }
  func.func @transform_5(%arg0: i32) -> (i32, i32, i32) {
    %c0_i32 = arith.constant 0 : i32
    %c0_i32_0 = arith.constant 0 : i32
    %c0_i32_1 = arith.constant 0 : i32
    return %arg0, %c0_i32, %c0_i32_0 : i32, i32, i32
  }
}

module attributes {stable_mosaic.version = 11 : i64} {
  func.func @_vq_kernel(%arg0: i32, %arg1: memref<128x4xf32, #tpu.memory_space<vmem>>, %arg2: memref<4x128xf32, #tpu.memory_space<vmem>>, %arg3: memref<128x4xf32, #tpu.memory_space<vmem>>, %arg4: memref<1x128xf32, #tpu.memory_space<vmem>>, %arg5: memref<128x4xf32, #tpu.memory_space<vmem>>, %arg6: memref<1x8x128xf32, #tpu.memory_space<vmem>>) attributes {dimension_semantics = [#tpu.dimension_semantics<parallel>], iteration_bounds = array<i64: 4>, scalar_prefetch = 0 : i64, scratch_operands = 0 : i64, tpu.core_type = #tpu.core_type<tc>, window_params = [{transform_indices = @transform_0, window_bounds = array<i64: 128, 4>}, {pipeline_mode = #tpu.pipeline_mode<synchronous>, transform_indices = @transform_1, window_bounds = array<i64: 4, 128>}, {pipeline_mode = #tpu.pipeline_mode<synchronous>, transform_indices = @transform_2, window_bounds = array<i64: 128, 4>}, {pipeline_mode = #tpu.pipeline_mode<synchronous>, transform_indices = @transform_3, window_bounds = array<i64: 1, 128>}, {transform_indices = @transform_4, window_bounds = array<i64: 128, 4>}, {transform_indices = @transform_5, window_bounds = array<i64: 1, 8, 128>}]} {
    %c0 = arith.constant 0 : index
    %c0_0 = arith.constant 0 : index
    %0 = vector.load %arg1[%c0, %c0_0] : memref<128x4xf32, #tpu.memory_space<vmem>>, vector<128x4xf32>
    %c0_1 = arith.constant 0 : index
    %c0_2 = arith.constant 0 : index
    %1 = vector.load %arg2[%c0_1, %c0_2] : memref<4x128xf32, #tpu.memory_space<vmem>>, vector<4x128xf32>
    %cst = arith.constant dense<0.000000e+00> : vector<128x128xf32>
    %2 = tpu.matmul %0, %1, %cst {dimension_numbers = #tpu.dot_dimension_numbers<[1], [0], [0], [1], [0, 0, 1, 1], [], []>} : vector<128x4xf32>, vector<4x128xf32>, vector<128x128xf32> -> vector<128x128xf32>
    %c0_3 = arith.constant 0 : index
    %c0_4 = arith.constant 0 : index
    %3 = vector.load %arg4[%c0_3, %c0_4] : memref<1x128xf32, #tpu.memory_space<vmem>>, vector<1x128xf32>
    %4 = vector.broadcast %3 : vector<1x128xf32> to vector<128x128xf32>
    %5 = arith.subf %4, %2 : vector<128x128xf32>
    %cst_5 = arith.constant dense<0x7F800000> : vector<128xf32>
    %6 = vector.multi_reduction <minimumf>, %5, %cst_5 [1] : vector<128x128xf32> to vector<128xf32>
    %7 = vector.shape_cast %6 : vector<128xf32> to vector<128x1xf32>
    %8 = tpu.iota {dimensions = array<i32: 1>} : vector<128x128xi32>
    %9 = vector.broadcast %7 : vector<128x1xf32> to vector<128x128xf32>
    %10 = arith.cmpf ole, %5, %9 : vector<128x128xf32>
    %c128_i32 = arith.constant 128 : i32
    %11 = vector.broadcast %c128_i32 : i32 to vector<128x128xi32>
    %12 = arith.select %10, %8, %11 : vector<128x128xi1>, vector<128x128xi32>
    %cst_6 = arith.constant dense<2147483647> : vector<128xi32>
    %13 = vector.multi_reduction <minsi>, %12, %cst_6 [1] : vector<128x128xi32> to vector<128xi32>
    %14 = vector.shape_cast %13 : vector<128xi32> to vector<128x1xi32>
    %15 = vector.broadcast %14 : vector<128x1xi32> to vector<128x128xi32>
    %16 = arith.cmpi eq, %8, %15 : vector<128x128xi32>
    %17 = arith.extui %16 : vector<128x128xi1> to vector<128x128xi32>
    %18 = arith.sitofp %17 : vector<128x128xi32> to vector<128x128xf32>
    %c0_7 = arith.constant 0 : index
    %c0_8 = arith.constant 0 : index
    %19 = vector.load %arg3[%c0_7, %c0_8] : memref<128x4xf32, #tpu.memory_space<vmem>>, vector<128x4xf32>
    %cst_9 = arith.constant dense<0.000000e+00> : vector<128x4xf32>
    %20 = tpu.matmul %18, %19, %cst_9 {dimension_numbers = #tpu.dot_dimension_numbers<[1], [0], [0], [1], [0, 0, 1, 1], [], []>} : vector<128x128xf32>, vector<128x4xf32>, vector<128x4xf32> -> vector<128x4xf32>
    %c0_10 = arith.constant 0 : index
    %c0_11 = arith.constant 0 : index
    %21 = vector.load %arg5[%c0_10, %c0_11] : memref<128x4xf32, #tpu.memory_space<vmem>>, vector<128x4xf32>
    tpu.vector_store %arg5[%c0_10, %c0_11], %20 {strides = array<i32>} : memref<128x4xf32, #tpu.memory_space<vmem>>, vector<128x4xf32>,
    %22 = arith.subf %20, %0 : vector<128x4xf32>
    %23 = arith.mulf %22, %22 : vector<128x4xf32>
    %cst_12 = arith.constant dense<0.000000e+00> : vector<128xf32>
    %24 = vector.multi_reduction <add>, %23, %cst_12 [1] : vector<128x4xf32> to vector<128xf32>
    %25 = vector.shape_cast %24 : vector<128xf32> to vector<128x1xf32>
    %26 = vector.shape_cast %25 : vector<128x1xf32> to vector<1x128x1xf32>
    %cst_13 = arith.constant dense<0.000000e+00> : vector<1xf32>
    %27 = vector.multi_reduction <add>, %26, %cst_13 [1, 2] : vector<1x128x1xf32> to vector<1xf32>
    %28 = vector.shape_cast %27 : vector<1xf32> to vector<1x1x1xf32>
    %29 = vector.extract %28[0, 0, 0] : f32 from vector<1x1x1xf32>
    %30 = vector.broadcast %29 : f32 to vector<1x8x128xf32>
    %c0_14 = arith.constant 0 : index
    %c0_15 = arith.constant 0 : index
    %c0_16 = arith.constant 0 : index
    %31 = vector.load %arg6[%c0_14, %c0_15, %c0_16] : memref<1x8x128xf32, #tpu.memory_space<vmem>>, vector<1x8x128xf32>
    tpu.vector_store %arg6[%c0_14, %c0_15, %c0_16], %30 {strides = array<i32>} : memref<1x8x128xf32, #tpu.memory_space<vmem>>, vector<1x8x128xf32>,
    return
  }
  func.func @transform_0(%arg0: i32) -> (i32, i32) {
    %c0_i32 = arith.constant 0 : i32
    %c0_i32_0 = arith.constant 0 : i32
    return %arg0, %c0_i32 : i32, i32
  }
  func.func @transform_1(%arg0: i32) -> (i32, i32) {
    %c0_i32 = arith.constant 0 : i32
    %c0_i32_0 = arith.constant 0 : i32
    %c0_i32_1 = arith.constant 0 : i32
    return %c0_i32, %c0_i32_0 : i32, i32
  }
  func.func @transform_2(%arg0: i32) -> (i32, i32) {
    %c0_i32 = arith.constant 0 : i32
    %c0_i32_0 = arith.constant 0 : i32
    %c0_i32_1 = arith.constant 0 : i32
    return %c0_i32, %c0_i32_0 : i32, i32
  }
  func.func @transform_3(%arg0: i32) -> (i32, i32) {
    %c0_i32 = arith.constant 0 : i32
    %c0_i32_0 = arith.constant 0 : i32
    %c0_i32_1 = arith.constant 0 : i32
    return %c0_i32, %c0_i32_0 : i32, i32
  }
  func.func @transform_4(%arg0: i32) -> (i32, i32) {
    %c0_i32 = arith.constant 0 : i32
    %c0_i32_0 = arith.constant 0 : i32
    return %arg0, %c0_i32 : i32, i32
  }
  func.func @transform_5(%arg0: i32) -> (i32, i32, i32) {
    %c0_i32 = arith.constant 0 : i32
    %c0_i32_0 = arith.constant 0 : i32
    %c0_i32_1 = arith.constant 0 : i32
    return %arg0, %c0_i32, %c0_i32_0 : i32, i32, i32
  }
}

</mosaic_0001>

<bundles_post_ra>
// kernel: tpu_custom_call.1
= control target key start
LH: loop header
LB: loop body
LE: loop exit
PB: predicated region body
PF: predicated region fallthrough
CT: control target
= control target key end

     0   :  { %11 = vsyncpa [#allocation3], 0  ;;  %s2215_s0 = inlined_call_operand.vmem [shape: f32[512,4], index: 0, kind: input, shape index: {}]   ;;  %s2216_s1 = inlined_call_operand.vmem [shape: f32[4,128], index: 1, kind: input, shape index: {}]   ;;  %s2217_s2 = inlined_call_operand.vmem [shape: f32[128,4], index: 2, kind: input, shape index: {}]   ;;  %s2218_s3 = inlined_call_operand.vmem [shape: f32[1,128], index: 3, kind: input, shape index: {}]   ;;  %s2219_s4 = inlined_call_operand.vmem [shape: f32[512,4], index: 4, kind: output, shape index: {0}]   ;;  %s2220_s5 = inlined_call_operand.hbm [shape: f32[4,8,128], index: 5, kind: output, shape index: {1}]  }
   0x1   :  { %13 = vsyncpa [#allocation3 + $0x1], 0  ;;  %s1602_s18 = smov 0   ;;  %s1604_s19 = smov 0  }
   0x2   :  { %s1606_s20 = smov 0   ;;  %s1608_s21 = smov 0  }
   0x3 LB: > { %s1623_s22 = sadd.s32 4294967295, %s1568_s21   ;;  %s1222_s23 = sadd.s32 4294967294, %s1568_s21   ;;  %s1568_s21 = sphi %s1608_s21, %s2226_s21   ;;  %s1564_s20 = sphi %s1606_s20, %s2225_s20   ;;  %s1560_s19 = sphi %s1604_s19, %s2224_s19   ;;  %s1556_s18 = sphi %s1602_s18, %s2223_s18  }
   0x4   : > { %s1627_s24 = sadd.s32 1, %s1568_s21   ;;  %s141_s25 = sadd.s32 1, %s1564_s20 }
   0x5   : > { %s138_s26 = ssub.s32 %s1568_s21, %s1627_s24  ;;  %p151_p0 = scmp.ne.s32.totalorder %s1564_s20, %s1560_s19 }
   0x6   : > { %p139_p1 = scmp.eq.s32.totalorder %s138_s26, 0  ;;  %p152_p2 = scmp.eq.s32.totalorder %s1623_s22, 3 }
   0x7   : > { %p157_p3 = scmp.ne.s32.totalorder %s1560_s19, %s1556_s18  ;;  %p158_p4 = scmp.eq.s32.totalorder %s1222_s23, 3 }
   0x8   : > { %s1638_s27 = scalar_select %p139_p1, %s1564_s20, %s141_s25  }
   0x9   : > { %p1640_p5 = por %p152_p2, %p151_p0  ;;  %p1644_p6 = por %p158_p4, %p157_p3 }
   0xa   : > { %p1225_p7 = scmp.ge.s32.totalorder %s1568_s21, 1  ;;  %p194_p8 = scmp.lt.s32.totalorder %s1568_s21, 5 }
   0xc   : > { %p195_p9 = pnand %p1225_p7, %p194_p8 }
   0xd   : > { %v255_v0 = vld [vmem:[%s2216_s1] sm:$0xf] (!%p195_p9)  ;;  %vm305_vm0 = vcmask (!%p195_p9), 1043456   ;;  %s1227_s7 = sshll.u32 (!%p195_p9), %s1623_s22, 4  ;;  %vm256_vm1 = vcmask (!%p195_p9), 31744   ;;  %v509_v50 = vlaneseq (!%p195_p9)  ;;  %s1282_s9 = sshll.u32 (!%p195_p9), %s1623_s22, 7 }
   0xe   : > { %198 = sbr.rel (%p195_p9) target bundleno = 1296 (0x510), region = 36  ;;  %1334 = vmatprep.subr.msk.mxu0 (!%p195_p9), %vm305_vm0, %v255_v0  ;;  %p228_p10 = scmp.lt.s32.totalorder (!%p195_p9), %s1227_s7, 63  ;;  %v1248_v17 = vld [vmem:[%s2218_s3] ss:$0 sm:$0xff] (!%p195_p9) }
   0xf   : > { %1335 = vmatpush3.msk.msra.mxu0 (!%p195_p9), %vm305_vm0, %v255_v0  ;;  %v1780_v51 = vand.u32 (!%p195_p9), 127, %v509_v50  ;;  %s2175_s13 = scalar_lea.hbm (!%p195_p9), %s2220_s5, %s1282_s9  ;;  %s1571_s22 = smov (!%p195_p9), [#allocation2]  }
  0x10   : > { %s1510_s16 = sshll.u32 (!%p195_p9), %s1571_s22, 4  ;;  %s1511_s16 = int_to_ptr.vmem [resolvable:$false] %s1510_s16 }
  0x11   : > { %s1512_s17 = scalar_lea.vmem (!%p195_p9), %s1511_s16, 256 }
  0x15   : > { %s2228_s7 = smov (!%p228_p10, %s1227_s7), 63 }
  0x16   : > { %s1228_s8 = sshll.u32 %s2228_s7, 3  ;;  %s224_s7 = sand.u32 1, %s1560_s19  }
  0x17   : > { %s1662_s11 = scalar_lea.vmem %s2215_s0, %s1228_s8  ;;  %s2086_s26 = scalar_lea.vmem %s2219_s4, %s1228_s8 }
  0x18   : > { %v1665_v1 = vld [vmem:[%s1662_s11] sm:$0xff]  ;;  %v1668_v2 = vld [vmem:[%s1662_s11 + $0x8] sm:$0xff]  ;;  %v1671_v3 = vld [vmem:[%s1662_s11 + $0x10] sm:$0xff]  ;;  %s1226_s8 = sshll.u32 %s224_s7, 3  ;;  %s1121_s14 = scalar_lea.sflag [#allocation3], %s224_s7 }
  0x19   : > { %1336 = vmatprep.mubr.msk.f32.mxu0 %vm256_vm1, %v1665_v1  ;;  %v1680_v4 = vld [vmem:[%s1662_s11 + $0x18] sm:$0xff]  ;;  %v1683_v5 = vld [vmem:[%s1662_s11 + $0x20] sm:$0xff]  ;;  %v1690_v6 = vld [vmem:[%s1662_s11 + $0x28] sm:$0xff]  ;;  %s226_s30 = scalar_lea.vmem [#allocation2], %s1226_s8 }
  0x1a   : > { %1337 = vmatmul.mubr.msk.f32.vlgmr.msra.gmra.mrb[0].mxu0 %vm256_vm1, %v1668_v2  ;;  %v1693_v7 = vld [vmem:[%s1662_s11 + $0x30] sm:$0xff]  ;;  %v1700_v8 = vld [vmem:[%s1662_s11 + $0x38] sm:$0xff]  ;;  %v1703_v9 = vld [vmem:[%s1662_s11 + $0x40] sm:$0xff]  ;;  %s1138_s6 = sshll.u32 %s226_s30, 4  ;;  %s2170_s6 = int_to_ptr.vmem [resolvable:$true] %s1138_s6 }
  0x1b   : > { %1339 = vmatprep.mubr.msk.f32.mxu0 %vm256_vm1, %v1671_v3  ;;  %v1710_v10 = vld [vmem:[%s1662_s11 + $0x48] sm:$0xff]  ;;  %v1713_v11 = vld [vmem:[%s1662_s11 + $0x50] sm:$0xff]  ;;  %v1720_v12 = vld [vmem:[%s1662_s11 + $0x58] sm:$0xff]  ;;  %s1506_s15 = scalar_lea.vmem %s2170_s6, 128  ;;  %p1513_p0 = scmp.lt.s32.totalorder %s2170_s6, %s1511_s16 }
  0x1c   : > { %v1723_v13 = vld [vmem:[%s1662_s11 + $0x60] sm:$0xff]  ;;  %v1730_v14 = vld [vmem:[%s1662_s11 + $0x68] sm:$0xff]  ;;  %v1733_v15 = vld [vmem:[%s1662_s11 + $0x70] sm:$0xff]  ;;  %p1507_p11 = scmp.ne.s32.totalorder %s2170_s6, %s1506_s15  ;;  %p1514_p1 = scmp.lt.s32.totalorder %s1512_s17, %s1506_s15 }
  0x1d   : > { %v1740_v16 = vld [vmem:[%s1662_s11 + $0x78] sm:$0xff] }
  0x1e   : > { %1340 = vmatmul.mubr.msk.f32.gmra.mrb[2].mxu0 %vm256_vm1, %v1680_v4  ;;  %p1508_p12 = pnand %p1507_p11, %p1640_p5  ;;  %p1515_p2 = por %p1514_p1, %p1513_p0 }
  0x1f   : > { %1342 = vmatprep.mubr.msk.f32.mxu0 %vm256_vm1, %v1683_v5 }
  0x20   : > { %p1509_p13 = pneg %p1508_p12 }
  0x22   : > { %1343 = vmatmul.mubr.msk.f32.gmra.mrb[4].mxu0 %vm256_vm1, %v1690_v6  ;;  %p1516_p3 = pnand %p1515_p2, %p1509_p13 }
  0x23   : > { %1345 = vmatprep.mubr.msk.f32.mxu0 %vm256_vm1, %v1693_v7 }
  0x26   : > { %1346 = vmatmul.mubr.msk.f32.gmra.mrb[6].mxu0 %vm256_vm1, %v1700_v8 }
  0x27   : > { %1348 = vmatprep.mubr.msk.f32.mxu0 %vm256_vm1, %v1703_v9 }
  0x2a   : > { %1349 = vmatmul.mubr.msk.f32.gmra.mrb[8].mxu0 %vm256_vm1, %v1710_v10 }
  0x2b   : > { %1351 = vmatprep.mubr.msk.f32.mxu0 %vm256_vm1, %v1713_v11 }
  0x2e   : > { %1352 = vmatmul.mubr.msk.f32.gmra.mrb[10].mxu0 %vm256_vm1, %v1720_v12 }
  0x2f   : > { %1354 = vmatprep.mubr.msk.f32.mxu0 %vm256_vm1, %v1723_v13 }
  0x32   : > { %1355 = vmatmul.mubr.msk.f32.gmra.mrb[12].mxu0 %vm256_vm1, %v1730_v14 }
  0x33   : > { %1357 = vmatprep.mubr.msk.f32.mxu0 %vm256_vm1, %v1733_v15 }
  0x36   : > { %1358 = vmatmul.mubr.msk.f32.gmra.mrb[14].mxu0 %vm256_vm1, %v1740_v16 }
  0xed   : > { %v1338_v18 = vpop.f32.mrb[0].mxu0 }
  0xee   : > { %v375_v19 = vpop.f32.mrb[1].mxu0  ;;  %v462_v23 = vsub.f32 %v1248_v17, %v1338_v18 }
  0xef   : > { %v461_v20 = vsub.f32 %v1248_v17, %v375_v19 }
  0xf1   : > { %477 = vmin.xlane.f32.xlu0 %v461_v20  ;;  %v1341_v21 = vpop.f32.mrb[2].mxu0 }
  0xf2   : > { %v385_v22 = vpop.f32.mrb[3].mxu0  ;;  %v464_v27 = vsub.f32 %v1248_v17, %v1341_v21 }
  0xf3   : > { %v463_v24 = vsub.f32 %v1248_v17, %v385_v22 }
  0xf5   : > { %479 = vmin.xlane.f32.xlu0 %v462_v23  ;;  %481 = vmin.xlane.f32.xlu1 %v463_v24  ;;  %v1344_v25 = vpop.f32.mrb[4].mxu0 }
  0xf6   : > { %v395_v26 = vpop.f32.mrb[5].mxu0  ;;  %v1747_v31 = vsub.f32 %v1248_v17, %v1344_v25 }
  0xf7   : > { %v465_v28 = vsub.f32 %v1248_v17, %v395_v26 }
  0xf9   : > { %483 = vmin.xlane.f32.xlu1 %v464_v27  ;;  %485 = vmin.xlane.f32.xlu0 %v465_v28  ;;  %v1347_v29 = vpop.f32.mrb[6].mxu0 }
  0xfa   : > { %v405_v30 = vpop.f32.mrb[7].mxu0  ;;  %v1753_v35 = vsub.f32 %v1248_v17, %v1347_v29 }
  0xfb   : > { %v1749_v32 = vsub.f32 %v1248_v17, %v405_v30 }
  0xfd   : > { %487 = vmin.xlane.f32.xlu1 %v1747_v31  ;;  %489 = vmin.xlane.f32.xlu0 %v1749_v32  ;;  %v1350_v33 = vpop.f32.mrb[8].mxu0 }
  0xfe   : > { %v415_v34 = vpop.f32.mrb[9].mxu0  ;;  %v1759_v39 = vsub.f32 %v1248_v17, %v1350_v33 }
  0xff   : > { %v1755_v36 = vsub.f32 %v1248_v17, %v415_v34 }
 0x101   : > { %491 = vmin.xlane.f32.xlu1 %v1753_v35  ;;  %493 = vmin.xlane.f32.xlu0 %v1755_v36  ;;  %v1353_v37 = vpop.f32.mrb[10].mxu0 }
 0x102   : > { %v425_v38 = vpop.f32.mrb[11].mxu0  ;;  %v1765_v43 = vsub.f32 %v1248_v17, %v1353_v37 }
 0x103   : > { %v1761_v40 = vsub.f32 %v1248_v17, %v425_v38 }
 0x105   : > { %495 = vmin.xlane.f32.xlu1 %v1759_v39  ;;  %497 = vmin.xlane.f32.xlu0 %v1761_v40  ;;  %v1356_v41 = vpop.f32.mrb[12].mxu0 }
 0x106   : > { %v435_v42 = vpop.f32.mrb[13].mxu0  ;;  %v1771_v47 = vsub.f32 %v1248_v17, %v1356_v41 }
 0x107   : > { %v1767_v44 = vsub.f32 %v1248_v17, %v435_v42 }
 0x109   : > { %499 = vmin.xlane.f32.xlu1 %v1765_v43  ;;  %501 = vmin.xlane.f32.xlu0 %v1767_v44  ;;  %v1359_v45 = vpop.f32.mrb[14].mxu0 }
 0x10a   : > { %v445_v46 = vpop.f32.mrb[15].mxu0  ;;  %v1777_v49 = vsub.f32 %v1248_v17, %v1359_v45 }
 0x10b   : > { %v1773_v48 = vsub.f32 %v1248_v17, %v445_v46 }
 0x10d   : > { %503 = vmin.xlane.f32.xlu1 %v1771_v47  ;;  %505 = vmin.xlane.f32.xlu0 %v1773_v48 }
 0x111   : > { %507 = vmin.xlane.f32.xlu1 %v1777_v49 }
 0x17e   : > { %v478_v52 = vpop.xlane.xlu0 %477 }
 0x17f   : > { %vm511_vm2 = vcmp.le.f32.partialorder %v461_v20, %v478_v52 }
 0x180   : > { %v1783_v53 = vsel %vm511_vm2, %v1780_v51, 128 }
 0x181   : > { %v544_v54 = vshra.s32 %v1783_v53, 16 }
 0x182   : > { %v480_v55 = vpop.xlane.xlu0 %479  ;;  %v482_v56 = vpop.xlane.xlu1 %481 }
 0x183   : > { %vm512_vm3 = vcmp.le.f32.partialorder %v462_v23, %v480_v55  ;;  %vm513_vm4 = vcmp.le.f32.partialorder %v463_v24, %v482_v56  ;;  %v1786_v57 = vcvt.s32.f32 %v544_v54 }
 0x184   : > { %v1789_v58 = vsel %vm512_vm3, %v1780_v51, 128  ;;  %v1792_v59 = vsel %vm513_vm4, %v1780_v51, 128 }
 0x185   : > { %547 = vmin.xlane.f32.xlu0 %v1786_v57  ;;  %v558_v60 = vshra.s32 %v1789_v58, 16  ;;  %v572_v61 = vshra.s32 %v1792_v59, 16 }
 0x186   : > { %v484_v62 = vpop.xlane.xlu1 %483  ;;  %v486_v63 = vpop.xlane.xlu0 %485 }
 0x187   : > { %vm514_vm5 = vcmp.le.f32.partialorder %v464_v27, %v484_v62  ;;  %vm515_vm6 = vcmp.le.f32.partialorder %v465_v28, %v486_v63  ;;  %v1797_v0 = vcvt.s32.f32 %v558_v60  ;;  %v1799_v17 = vcvt.s32.f32 %v572_v61 }
 0x188   : > { %v1802_v18 = vsel %vm514_vm5, %v1780_v51, 128  ;;  %v1805_v19 = vsel %vm515_vm6, %v1780_v51, 128 }
 0x189   : > { %561 = vmin.xlane.f32.xlu1 %v1797_v0  ;;  %575 = vmin.xlane.f32.xlu0 %v1799_v17  ;;  %v586_v20 = vshra.s32 %v1802_v18, 16  ;;  %v600_v21 = vshra.s32 %v1805_v19, 16 }
 0x18a   : > { %v488_v22 = vpop.xlane.xlu1 %487  ;;  %v490_v23 = vpop.xlane.xlu0 %489 }
 0x18b   : > { %vm516_vm7 = vcmp.le.f32.partialorder %v1747_v31, %v488_v22  ;;  %vm517_vm8 = vcmp.le.f32.partialorder %v1749_v32, %v490_v23  ;;  %v1813_v24 = vcvt.s32.f32 %v586_v20  ;;  %v1815_v25 = vcvt.s32.f32 %v600_v21 }
 0x18c   : > { %v1818_v26 = vsel %vm516_vm7, %v1780_v51, 128  ;;  %v1821_v27 = vsel %vm517_vm8, %v1780_v51, 128 }
 0x18d   : > { %589 = vmin.xlane.f32.xlu1 %v1813_v24  ;;  %603 = vmin.xlane.f32.xlu0 %v1815_v25  ;;  %v614_v28 = vshra.s32 %v1818_v26, 16  ;;  %v628_v29 = vshra.s32 %v1821_v27, 16 }
 0x18e   : > { %v492_v30 = vpop.xlane.xlu1 %491  ;;  %v494_v31 = vpop.xlane.xlu0 %493 }
 0x18f   : > { %vm518_vm9 = vcmp.le.f32.partialorder %v1753_v35, %v492_v30  ;;  %vm519_vm10 = vcmp.le.f32.partialorder %v1755_v36, %v494_v31  ;;  %v1829_v32 = vcvt.s32.f32 %v614_v28  ;;  %v1831_v33 = vcvt.s32.f32 %v628_v29 }
 0x190   : > { %v1834_v34 = vsel %vm518_vm9, %v1780_v51, 128  ;;  %v1837_v37 = vsel %vm519_vm10, %v1780_v51, 128 }
 0x191   : > { %617 = vmin.xlane.f32.xlu1 %v1829_v32  ;;  %631 = vmin.xlane.f32.xlu0 %v1831_v33  ;;  %v642_v38 = vshra.s32 %v1834_v34, 16  ;;  %v656_v35 = vshra.s32 %v1837_v37, 16 }
 0x192   : > { %v496_v41 = vpop.xlane.xlu1 %495  ;;  %v498_v36 = vpop.xlane.xlu0 %497 }
 0x193   : > { %vm520_vm11 = vcmp.le.f32.partialorder %v1759_v39, %v496_v41  ;;  %vm521_vm12 = vcmp.le.f32.partialorder %v1761_v40, %v498_v36  ;;  %v1845_v42 = vcvt.s32.f32 %v642_v38  ;;  %v1847_v45 = vcvt.s32.f32 %v656_v35  ;;  %v816_v41 = vld [vmem:[%s2217_s2 + $0x8] sm:$0xff]  ;;  %v817_v36 = vld [vmem:[%s2217_s2 + $0x10] sm:$0xff] }
 0x194   : > { %v1850_v46 = vsel %vm520_vm11, %v1780_v51, 128  ;;  %v1853_v50 = vsel %vm521_vm12, %v1780_v51, 128 }
 0x195   : > { %645 = vmin.xlane.f32.xlu1 %v1845_v42  ;;  %659 = vmin.xlane.f32.xlu0 %v1847_v45  ;;  %v670_v52 = vshra.s32 %v1850_v46, 16  ;;  %v684_v39 = vshra.s32 %v1853_v50, 16 }
 0x196   : > { %v500_v54 = vpop.xlane.xlu1 %499  ;;  %v502_v40 = vpop.xlane.xlu0 %501 }
 0x197   : > { %vm522_vm13 = vcmp.le.f32.partialorder %v1765_v43, %v500_v54  ;;  %vm523_vm14 = vcmp.le.f32.partialorder %v1767_v44, %v502_v40  ;;  %v1861_v55 = vcvt.s32.f32 %v670_v52  ;;  %v1863_v56 = vcvt.s32.f32 %v684_v39  ;;  %v818_v39 = vld [vmem:[%s2217_s2 + $0x18] sm:$0xff]  ;;  %v819_v40 = vld [vmem:[%s2217_s2 + $0x20] sm:$0xff] }
 0x198   : > { %v1866_v60 = vsel %vm522_vm13, %v1780_v51, 128  ;;  %v1869_v61 = vsel %vm523_vm14, %v1780_v51, 128  ;;  %v1420_v54 = vpack.c.bf16 %v818_v39, %v817_v36  ;;  %v557_v39 = vand.u32 65535, %v1789_v58 }
 0x199   : > { %673 = vmin.xlane.f32.xlu1 %v1861_v55  ;;  %687 = vmin.xlane.f32.xlu0 %v1863_v56  ;;  %v698_v62 = vshra.s32 %v1866_v60, 16  ;;  %v712_v43 = vshra.s32 %v1869_v61, 16 }
 0x19a   : > { %v504_v63 = vpop.xlane.xlu1 %503  ;;  %v506_v44 = vpop.xlane.xlu0 %505 }
 0x19b   : > { %vm524_vm15 = vcmp.le.f32.partialorder %v1771_v47, %v504_v63  ;;  %vm525_vm0 = vcmp.le.f32.partialorder %v1773_v48, %v506_v44  ;;  %v1877_v20 = vcvt.s32.f32 %v698_v62  ;;  %v1879_v21 = vcvt.s32.f32 %v712_v43  ;;  %v820_v62 = vld [vmem:[%s2217_s2 + $0x28] sm:$0xff]  ;;  %v821_v63 = vld [vmem:[%s2217_s2 + $0x30] sm:$0xff]  ;;  %v822_v44 = vld [vmem:[%s2217_s2 + $0x38] sm:$0xff] }
 0x19c   : > { %v1882_v22 = vsel %vm524_vm15, %v1780_v51, 128  ;;  %v1885_v23 = vsel %vm525_vm0, %v1780_v51, 128  ;;  %v1424_v43 = vpack.c.bf16 %v820_v62, %v819_v40 }
 0x19d   : > { %701 = vmin.xlane.f32.xlu1 %v1877_v20  ;;  %715 = vmin.xlane.f32.xlu0 %v1879_v21  ;;  %v726_v28 = vshra.s32 %v1882_v22, 16  ;;  %v740_v47 = vshra.s32 %v1885_v23, 16 }
 0x19e   : > { %v508_v29 = vpop.xlane.xlu1 %507 }
 0x19f   : > { %vm526_vm2 = vcmp.le.f32.partialorder %v1777_v49, %v508_v29  ;;  %v1892_v48 = vcvt.s32.f32 %v726_v28  ;;  %v1894_v30 = vcvt.s32.f32 %v740_v47  ;;  %v815_v49 = vld [vmem:[%s2217_s2] sm:$0xff]  ;;  %v1428_v28 = vpack.c.bf16 %v822_v44, %v821_v63  ;;  %v824_v29 = vld [vmem:[%s2217_s2 + $0x48] sm:$0xff] }
 0x1a0   : > { %v1897_v31 = vsel %vm526_vm2, %v1780_v51, 128  ;;  %v1416_v52 = vpack.c.bf16 %v816_v41, %v815_v49  ;;  %v823_v47 = vld [vmem:[%s2217_s2 + $0x40] sm:$0xff]  ;;  %v825_v49 = vld [vmem:[%s2217_s2 + $0x50] sm:$0xff]  ;;  %v826_v41 = vld [vmem:[%s2217_s2 + $0x58] sm:$0xff]  ;;  %v585_v63 = vand.u32 65535, %v1802_v18  ;;  %v599_v44 = vand.u32 65535, %v1805_v19 }
 0x1a1   : > { %729 = vmin.xlane.f32.xlu1 %v1892_v48  ;;  %743 = vmin.xlane.f32.xlu0 %v1894_v30  ;;  %v754_v38 = vshra.s32 %v1897_v31, 16  ;;  %v1436_v36 = vpack.c.bf16 %v826_v41, %v825_v49  ;;  %v613_v18 = vand.u32 65535, %v1818_v26  ;;  %v627_v19 = vand.u32 65535, %v1821_v27 }
 0x1a2   : > { %1417 = vmatprep.subr.bf16.mxu0 %v1416_v52  ;;  %1448 = vmatprep.subr.bf16.mxu1 %v1416_v52  ;;  %v587_v49 = vcvt.s32.f32 %v585_v63  ;;  %v601_v41 = vcvt.s32.f32 %v599_v44  ;;  %v641_v26 = vand.u32 65535, %v1834_v34  ;;  %v655_v27 = vand.u32 65535, %v1837_v37 }
 0x1a3   : > { %v1902_v35 = vcvt.s32.f32 %v754_v38  ;;  %1419 = vmatpush3.bf16.msra.mxu0 %v1416_v52  ;;  %1456 = vmatpush3.bf16.msra.mxu1 %v1416_v52  ;;  %v1432_v38 = vpack.c.bf16 %v824_v29, %v823_v47  ;;  %v543_v52 = vand.u32 65535, %v1783_v53  ;;  %v559_v53 = vcvt.s32.f32 %v557_v39 }
 0x1a4   : > { %1421 = vmatprep.subr.bf16.mxu0 %v1420_v54  ;;  %1449 = vmatprep.subr.bf16.mxu1 %v1420_v54  ;;  %v615_v39 = vcvt.s32.f32 %v613_v18  ;;  %v669_v34 = vand.u32 65535, %v1850_v46  ;;  %v683_v37 = vand.u32 65535, %v1853_v50  ;;  %v643_v63 = vcvt.s32.f32 %v641_v26 }
 0x1a5   : > { %757 = vmin.xlane.f32.xlu1 %v1902_v35  ;;  %v545_v62 = vcvt.s32.f32 %v543_v52  ;;  %v657_v44 = vcvt.s32.f32 %v655_v27 }
 0x1a7   : > { %1423 = vmatpush3.bf16.msra.mxu0 %v1420_v54  ;;  %1457 = vmatpush3.bf16.msra.mxu1 %v1420_v54  ;;  %v571_v54 = vand.u32 65535, %v1792_v59 }
 0x1a8   : > { %1425 = vmatprep.subr.bf16.mxu0 %v1424_v43  ;;  %1450 = vmatprep.subr.bf16.mxu1 %v1424_v43 }
 0x1a9   : > { %v573_v58 = vcvt.s32.f32 %v571_v54  ;;  %v629_v54 = vcvt.s32.f32 %v627_v19  ;;  %v671_v19 = vcvt.s32.f32 %v669_v34 }
 0x1ab   : > { %1427 = vmatpush3.bf16.msra.mxu0 %v1424_v43  ;;  %1458 = vmatpush3.bf16.msra.mxu1 %v1424_v43 }
 0x1ac   : > { %1429 = vmatprep.subr.bf16.mxu0 %v1428_v28  ;;  %1451 = vmatprep.subr.bf16.mxu1 %v1428_v28 }
 0x1af   : > { %1431 = vmatpush3.bf16.msra.mxu0 %v1428_v28  ;;  %1459 = vmatpush3.bf16.msra.mxu1 %v1428_v28 }
 0x1b0   : > { %1433 = vmatprep.subr.bf16.mxu0 %v1432_v38  ;;  %1452 = vmatprep.subr.bf16.mxu1 %v1432_v38 }
 0x1b3   : > { %1435 = vmatpush3.bf16.msra.mxu0 %v1432_v38  ;;  %1460 = vmatpush3.bf16.msra.mxu1 %v1432_v38 }
 0x1b4   : > { %1437 = vmatprep.subr.bf16.mxu0 %v1436_v36  ;;  %1453 = vmatprep.subr.bf16.mxu1 %v1436_v36 }
 0x1b7   : > { %1439 = vmatpush3.bf16.msra.mxu0 %v1436_v36  ;;  %1461 = vmatpush3.bf16.msra.mxu1 %v1436_v36 }
 0x212   : > { %v1944_v40 = vpop.xlane.xlu0 %547 }
 0x213   : > { %vm549_vm3 = vcmp.eq.f32.partialorder %v1786_v57, %v1944_v40 }
 0x214   : > { %v550_v43 = vsel %vm549_vm3, %v545_v62, inf }
 0x215   : > { %551 = vmin.xlane.f32.xlu0 %v550_v43 }
 0x216   : > { %v1950_v28 = vpop.xlane.xlu1 %561  ;;  %v1952_v47 = vpop.xlane.xlu0 %575 }
 0x217   : > { %vm563_vm4 = vcmp.eq.f32.partialorder %v1797_v0, %v1950_v28  ;;  %vm577_vm5 = vcmp.eq.f32.partialorder %v1799_v17, %v1952_v47 }
 0x218   : > { %v564_v59 = vsel %vm563_vm4, %v559_v53, inf  ;;  %v578_v57 = vsel %vm577_vm5, %v573_v58, inf  ;;  %v697_v58 = vand.u32 65535, %v1866_v60 }
 0x219   : > { %565 = vmin.xlane.f32.xlu1 %v564_v59  ;;  %579 = vmin.xlane.f32.xlu0 %v578_v57  ;;  %v711_v59 = vand.u32 65535, %v1869_v61 }
 0x21a   : > { %v1960_v29 = vpop.xlane.xlu1 %589  ;;  %v1962_v38 = vpop.xlane.xlu0 %603 }
 0x21b   : > { %vm591_vm6 = vcmp.eq.f32.partialorder %v1813_v24, %v1960_v29  ;;  %vm605_vm7 = vcmp.eq.f32.partialorder %v1815_v25, %v1962_v38 }
 0x21c   : > { %v592_v0 = vsel %vm591_vm6, %v587_v49, inf  ;;  %v606_v17 = vsel %vm605_vm7, %v601_v41, inf  ;;  %v685_v49 = vcvt.s32.f32 %v683_v37 }
 0x21d   : > { %593 = vmin.xlane.f32.xlu1 %v592_v0  ;;  %607 = vmin.xlane.f32.xlu0 %v606_v17  ;;  %v725_v0 = vand.u32 65535, %v1882_v22  ;;  %v739_v17 = vand.u32 65535, %v1885_v23  ;;  %v753_v23 = vand.u32 65535, %v1897_v31 }
 0x21e   : > { %v1970_v36 = vpop.xlane.xlu1 %617  ;;  %v1972_v52 = vpop.xlane.xlu0 %631 }
 0x21f   : > { %vm619_vm8 = vcmp.eq.f32.partialorder %v1829_v32, %v1970_v36  ;;  %vm633_vm9 = vcmp.eq.f32.partialorder %v1831_v33, %v1972_v52  ;;  %v827_v32 = vld [vmem:[%s2217_s2 + $0x60] sm:$0xff]  ;;  %v828_v33 = vld [vmem:[%s2217_s2 + $0x68] sm:$0xff]  ;;  %v741_v34 = vcvt.s32.f32 %v739_v17 }
 0x220   : > { %v620_v24 = vsel %vm619_vm8, %v615_v39, inf  ;;  %v634_v25 = vsel %vm633_vm9, %v629_v54, inf  ;;  %v1440_v53 = vpack.c.bf16 %v828_v33, %v827_v32  ;;  %v699_v39 = vcvt.s32.f32 %v697_v58 }
 0x221   : > { %621 = vmin.xlane.f32.xlu1 %v620_v24  ;;  %635 = vmin.xlane.f32.xlu0 %v634_v25  ;;  %v727_v25 = vcvt.s32.f32 %v725_v0  ;;  %v568_v32 = vcvt.f32.s32 %v1950_v28  ;;  %v596_v58 = vcvt.f32.s32 %v1960_v29  ;;  %v638_v29 = vcvt.f32.s32 %v1972_v52 }
 0x222   : > { %v1980_v62 = vpop.xlane.xlu1 %645  ;;  %v1982_v43 = vpop.xlane.xlu0 %659  ;;  %1441 = vmatprep.subr.bf16.mxu0 %v1440_v53  ;;  %1454 = vmatprep.subr.bf16.mxu1 %v1440_v53 }
 0x223   : > { %vm647_vm10 = vcmp.eq.f32.partialorder %v1845_v42, %v1980_v62  ;;  %vm661_vm11 = vcmp.eq.f32.partialorder %v1847_v45, %v1982_v43  ;;  %v829_v42 = vld [vmem:[%s2217_s2 + $0x70] sm:$0xff]  ;;  %v830_v45 = vld [vmem:[%s2217_s2 + $0x78] sm:$0xff]  ;;  %1443 = vmatpush3.bf16.msra.mxu0 %v1440_v53  ;;  %1462 = vmatpush3.bf16.msra.mxu1 %v1440_v53  ;;  %v569_v53 = vshll.u32 %v568_v32, 16  ;;  %v666_v52 = vcvt.f32.s32 %v1982_v43 }
 0x224   : > { %v648_v46 = vsel %vm647_vm10, %v643_v63, inf  ;;  %v662_v50 = vsel %vm661_vm11, %v657_v44, inf  ;;  %v1444_v41 = vpack.c.bf16 %v830_v45, %v829_v42  ;;  %v755_v63 = vcvt.s32.f32 %v753_v23 }
 0x225   : > { %649 = vmin.xlane.f32.xlu1 %v648_v46  ;;  %663 = vmin.xlane.f32.xlu0 %v662_v50  ;;  %v554_v44 = vcvt.f32.s32 %v1944_v40  ;;  %v1570_v40 = vmov 1.0   ;;  %v639_v23 = vshll.u32 %v638_v29, 16  ;;  %v667_v32 = vshll.u32 %v666_v52, 16 }
 0x226   : > { %v1996_v57 = vpop.xlane.xlu1 %673  ;;  %v1998_v18 = vpop.xlane.xlu0 %687  ;;  %1445 = vmatprep.subr.bf16.mxu0 %v1444_v41  ;;  %1455 = vmatprep.subr.bf16.mxu1 %v1444_v41 }
 0x227   : > { %vm675_vm12 = vcmp.eq.f32.partialorder %v1861_v55, %v1996_v57  ;;  %vm689_vm13 = vcmp.eq.f32.partialorder %v1863_v56, %v1998_v18  ;;  %v713_v55 = vcvt.s32.f32 %v711_v59  ;;  %1447 = vmatpush3.bf16.msra.mxu0 %v1444_v41  ;;  %1463 = vmatpush3.bf16.msra.mxu1 %v1444_v41  ;;  %v555_v33 = vshll.u32 %v554_v44, 16 }
 0x228   : > { %v676_v60 = vsel %vm675_vm12, %v671_v19, inf  ;;  %v690_v61 = vsel %vm689_vm13, %v685_v49, inf  ;;  %v610_v59 = vcvt.f32.s32 %v1962_v38  ;;  %v624_v41 = vcvt.f32.s32 %v1970_v36 }
 0x229   : > { %677 = vmin.xlane.f32.xlu1 %v676_v60  ;;  %691 = vmin.xlane.f32.xlu0 %v690_v61  ;;  %v652_v36 = vcvt.f32.s32 %v1980_v62  ;;  %v680_v62 = vcvt.f32.s32 %v1996_v57  ;;  %v694_v43 = vcvt.f32.s32 %v1998_v18 }
 0x22a   : > { %v2012_v26 = vpop.xlane.xlu1 %701  ;;  %v2014_v27 = vpop.xlane.xlu0 %715  ;;  %v611_v61 = vshll.u32 %v610_v59, 16 }
 0x22b   : > { %vm703_vm14 = vcmp.eq.f32.partialorder %v1877_v20, %v2012_v26  ;;  %vm717_vm15 = vcmp.eq.f32.partialorder %v1879_v21, %v2014_v27  ;;  %v653_v44 = vshll.u32 %v652_v36, 16  ;;  %v695_v59 = vshll.u32 %v694_v43, 16 }
 0x22c   : > { %v704_v56 = vsel %vm703_vm14, %v699_v39, inf  ;;  %v718_v22 = vsel %vm717_vm15, %v713_v55, inf  ;;  %v708_v57 = vcvt.f32.s32 %v2012_v26  ;;  %v722_v18 = vcvt.f32.s32 %v2014_v27 }
 0x22d   : > { %705 = vmin.xlane.f32.xlu1 %v704_v56  ;;  %719 = vmin.xlane.f32.xlu0 %v718_v22  ;;  %v625_v22 = vshll.u32 %v624_v41, 16 }
 0x22e   : > { %v2021_v54 = vpop.xlane.xlu1 %729  ;;  %v2023_v24 = vpop.xlane.xlu0 %743 }
 0x22f   : > { %vm731_vm0 = vcmp.eq.f32.partialorder %v1892_v48, %v2021_v54  ;;  %vm745_vm2 = vcmp.eq.f32.partialorder %v1894_v30, %v2023_v24  ;;  %v582_v30 = vcvt.f32.s32 %v1952_v47  ;;  %v597_v47 = vshll.u32 %v596_v58, 16 }
 0x230   : > { %v732_v20 = vsel %vm731_vm0, %v727_v25, inf  ;;  %v746_v21 = vsel %vm745_vm2, %v741_v34, inf  ;;  %v681_v58 = vshll.u32 %v680_v62, 16  ;;  %v736_v26 = vcvt.f32.s32 %v2021_v54 }
 0x231   : > { %733 = vmin.xlane.f32.xlu1 %v732_v20  ;;  %747 = vmin.xlane.f32.xlu0 %v746_v21  ;;  %v750_v27 = vcvt.f32.s32 %v2023_v24 }
 0x232   : > { %v2029_v37 = vpop.xlane.xlu1 %757 }
 0x233   : > { %vm759_vm3 = vcmp.eq.f32.partialorder %v1902_v35, %v2029_v37  ;;  %v583_v35 = vshll.u32 %v582_v30, 16  ;;  %v764_v54 = vcvt.f32.s32 %v2029_v37 }
 0x234   : > { %v760_v31 = vsel %vm759_vm3, %v755_v63, inf }
 0x235   : > { %761 = vmin.xlane.f32.xlu1 %v760_v31 }
 0x2a2   : > { %v552_v48 = vpop.xlane.xlu0 %551 }
 0x2a3   : > { %v553_v46 = vcvt.f32.s32 %v552_v48 }
 0x2a5   : > { %v556_v50 = vadd.s32 %v555_v33, %v553_v46 }
 0x2a6   : > { %v566_v19 = vpop.xlane.xlu1 %565  ;;  %v580_v49 = vpop.xlane.xlu0 %579 }
 0x2a7   : > { %v567_v42 = vcvt.f32.s32 %v566_v19  ;;  %v581_v45 = vcvt.f32.s32 %v580_v49  ;;  %vm767_vm4 = vcmp.eq.s32.totalorder %v1780_v51, %v556_v50 }
 0x2a8   : > { %1392 = vmatprep.mubr.msk.f32.mxu0 %vm767_vm4, %v1570_v40 }
 0x2a9   : > { %v570_v28 = vadd.s32 %v569_v53, %v567_v42  ;;  %v584_v60 = vadd.s32 %v583_v35, %v581_v45 }
 0x2aa   : > { %v594_v0 = vpop.xlane.xlu1 %593  ;;  %v608_v38 = vpop.xlane.xlu0 %607 }
 0x2ab   : > { %vm768_vm5 = vcmp.eq.s32.totalorder %v1780_v51, %v570_v28  ;;  %v595_v17 = vcvt.f32.s32 %v594_v0  ;;  %v609_v39 = vcvt.f32.s32 %v608_v38  ;;  %vm769_vm6 = vcmp.eq.s32.totalorder %v1780_v51, %v584_v60 }
 0x2ac   : > { %1393 = vmatmul.mubr.msk.f32.vlgmr.msra.gmra.mrb[16].mxu0 %vm768_vm5, %v1570_v40  ;;  %v709_v60 = vshll.u32 %v708_v57, 16  ;;  %vm1072_vm5 = vcmask 7168  }
 0x2ad   : > { %v598_v55 = vadd.s32 %v597_v47, %v595_v17  ;;  %v612_v56 = vadd.s32 %v611_v61, %v609_v39  ;;  %1395 = vmatprep.mubr.msk.f32.mxu0 %vm769_vm6, %v1570_v40  ;;  %v723_v47 = vshll.u32 %v722_v18, 16  ;;  %v737_v39 = vshll.u32 %v736_v26, 16 }
 0x2ae   : > { %v622_v25 = vpop.xlane.xlu1 %621  ;;  %v636_v34 = vpop.xlane.xlu0 %635 }
 0x2af   : > { %v623_v20 = vcvt.f32.s32 %v622_v25  ;;  %v637_v21 = vcvt.f32.s32 %v636_v34  ;;  %vm770_vm7 = vcmp.eq.s32.totalorder %v1780_v51, %v598_v55  ;;  %vm771_vm8 = vcmp.eq.s32.totalorder %v1780_v51, %v612_v56 }
 0x2b0   : > { %1396 = vmatmul.mubr.msk.f32.gmra.mrb[18].mxu0 %vm770_vm7, %v1570_v40  ;;  %v751_v55 = vshll.u32 %v750_v27, 16  ;;  %v765_v34 = vshll.u32 %v764_v54, 16 }
 0x2b1   : > { %v626_v63 = vadd.s32 %v625_v22, %v623_v20  ;;  %1398 = vmatprep.mubr.msk.f32.mxu0 %vm771_vm8, %v1570_v40  ;;  %v640_v31 = vadd.s32 %v639_v23, %v637_v21 }
 0x2b2   : > { %v650_v48 = vpop.xlane.xlu1 %649  ;;  %v664_v33 = vpop.xlane.xlu0 %663 }
 0x2b3   : > { %v651_v30 = vcvt.f32.s32 %v650_v48  ;;  %v665_v46 = vcvt.f32.s32 %v664_v33  ;;  %vm772_vm9 = vcmp.eq.s32.totalorder %v1780_v51, %v626_v63  ;;  %vm773_vm10 = vcmp.eq.s32.totalorder %v1780_v51, %v640_v31 }
 0x2b4   : > { %1399 = vmatmul.mubr.msk.f32.gmra.mrb[20].mxu0 %vm772_vm9, %v1570_v40  ;;  %1401 = vmatprep.mubr.msk.f32.mxu1 %vm773_vm10, %v1570_v40 }
 0x2b5   : > { %v654_v50 = vadd.s32 %v653_v44, %v651_v30  ;;  %v668_v53 = vadd.s32 %v667_v32, %v665_v46 }
 0x2b6   : > { %v678_v19 = vpop.xlane.xlu1 %677  ;;  %v692_v49 = vpop.xlane.xlu0 %691 }
 0x2b7   : > { %v679_v35 = vcvt.f32.s32 %v678_v19  ;;  %v693_v42 = vcvt.f32.s32 %v692_v49  ;;  %vm774_vm11 = vcmp.eq.s32.totalorder %v1780_v51, %v654_v50  ;;  %vm775_vm12 = vcmp.eq.s32.totalorder %v1780_v51, %v668_v53 }
 0x2b8   : > { %1402 = vmatmul.mubr.msk.f32.vlgmr.msra.gmra.mrb[0].mxu1 %vm774_vm11, %v1570_v40 }
 0x2b9   : > { %v682_v45 = vadd.s32 %v681_v58, %v679_v35  ;;  %v696_v28 = vadd.s32 %v695_v59, %v693_v42  ;;  %1404 = vmatprep.mubr.msk.f32.mxu1 %vm775_vm12, %v1570_v40 }
 0x2ba   : > { %v706_v61 = vpop.xlane.xlu1 %705  ;;  %v720_v41 = vpop.xlane.xlu0 %719 }
 0x2bb   : > { %v707_v29 = vcvt.f32.s32 %v706_v61  ;;  %v721_v0 = vcvt.f32.s32 %v720_v41  ;;  %vm776_vm13 = vcmp.eq.s32.totalorder %v1780_v51, %v682_v45  ;;  %vm777_vm14 = vcmp.eq.s32.totalorder %v1780_v51, %v696_v28 }
 0x2bc   : > { %1405 = vmatmul.mubr.msk.f32.gmra.mrb[2].mxu1 %vm776_vm13, %v1570_v40 }
 0x2bd   : > { %v710_v38 = vadd.s32 %v709_v60, %v707_v29  ;;  %v724_v17 = vadd.s32 %v723_v47, %v721_v0  ;;  %1407 = vmatprep.mubr.msk.f32.mxu1 %vm777_vm14, %v1570_v40 }
 0x2be   : > { %v734_v56 = vpop.xlane.xlu1 %733  ;;  %v748_v24 = vpop.xlane.xlu0 %747 }
 0x2bf   : > { %v735_v22 = vcvt.f32.s32 %v734_v56  ;;  %v749_v23 = vcvt.f32.s32 %v748_v24  ;;  %vm778_vm15 = vcmp.eq.s32.totalorder %v1780_v51, %v710_v38  ;;  %vm779_vm0 = vcmp.eq.s32.totalorder %v1780_v51, %v724_v17 }
 0x2c0   : > { %1408 = vmatmul.mubr.msk.f32.gmra.mrb[4].mxu1 %vm778_vm15, %v1570_v40 }
 0x2c1   : > { %v738_v36 = vadd.s32 %v737_v39, %v735_v22  ;;  %v752_v52 = vadd.s32 %v751_v55, %v749_v23  ;;  %1410 = vmatprep.mubr.msk.f32.mxu1 %vm779_vm0, %v1570_v40 }
 0x2c2   : > { %v762_v25 = vpop.xlane.xlu1 %761 }
 0x2c3   : > { %v763_v20 = vcvt.f32.s32 %v762_v25  ;;  %vm780_vm2 = vcmp.eq.s32.totalorder %v1780_v51, %v738_v36  ;;  %vm781_vm3 = vcmp.eq.s32.totalorder %v1780_v51, %v752_v52 }
 0x2c4   : > { %1411 = vmatmul.mubr.msk.f32.gmra.mrb[6].mxu1 %vm780_vm2, %v1570_v40 }
 0x2c5   : > { %v766_v37 = vadd.s32 %v765_v34, %v763_v20  ;;  %1413 = vmatprep.mubr.msk.f32.mxu1 %vm781_vm3, %v1570_v40 }
 0x2c7   : > { %vm782_vm4 = vcmp.eq.s32.totalorder %v1780_v51, %v766_v37 }
 0x2c8   : > { %1414 = vmatmul.mubr.msk.f32.gmra.mrb[8].mxu1 %vm782_vm4, %v1570_v40 }
 0x37f   : > { %v1394_v21 = vpop.f32.mrb[16].mxu0 }
 0x380   : > { %977 = vst.msk [vmem:[%s2086_s26 + $0x8] sm:$0xff] %vm256_vm1, %v1394_v21  ;;  %v993_v63 = vsub.f32 %v1394_v21, %v1668_v2  ;;  %v897_v31 = vpop.f32.mrb[17].mxu0 }
 0x381   : > { %976 = vst.msk [vmem:[%s2086_s26] sm:$0xff] %vm256_vm1, %v897_v31  ;;  %v992_v51 = vsub.f32 %v897_v31, %v1665_v1 }
 0x382   : > { %v1009_v40 = vmul.f32 %v993_v63, %v993_v63 }
 0x383   : > { %v1008_v44 = vmul.f32 %v992_v51, %v992_v51  ;;  %v1397_v32 = vpop.f32.mrb[18].mxu0 }
 0x384   : > { %979 = vst.msk [vmem:[%s2086_s26 + $0x18] sm:$0xff] %vm256_vm1, %v1397_v32  ;;  %v995_v62 = vsub.f32 %v1397_v32, %v1680_v4  ;;  %v907_v43 = vpop.f32.mrb[19].mxu0  ;;  %v1027_v48 = vsel %vm256_vm1, %v1009_v40, 0.0 }
 0x385   : > { %978 = vst.msk [vmem:[%s2086_s26 + $0x10] sm:$0xff] %vm256_vm1, %v907_v43  ;;  %v994_v2 = vsub.f32 %v907_v43, %v1671_v3  ;;  %1028 = vadd.xlane.f32.xlu1 %v1027_v48  ;;  %v1024_v33 = vsel %vm256_vm1, %v1008_v44, 0.0 }
 0x386   : > { %v1011_v1 = vmul.f32 %v995_v62, %v995_v62  ;;  %1025 = vadd.xlane.f32.xlu0 %v1024_v33 }
 0x387   : > { %v1010_v30 = vmul.f32 %v994_v2, %v994_v2  ;;  %v1400_v46 = vpop.f32.mrb[20].mxu0 }
 0x388   : > { %981 = vst.msk [vmem:[%s2086_s26 + $0x28] sm:$0xff] %vm256_vm1, %v1400_v46  ;;  %v997_v4 = vsub.f32 %v1400_v46, %v1690_v6  ;;  %v917_v50 = vpop.f32.mrb[21].mxu0  ;;  %v1033_v53 = vsel %vm256_vm1, %v1011_v1, 0.0 }
 0x389   : > { %980 = vst.msk [vmem:[%s2086_s26 + $0x20] sm:$0xff] %vm256_vm1, %v917_v50  ;;  %v996_v3 = vsub.f32 %v917_v50, %v1683_v5  ;;  %1034 = vadd.xlane.f32.xlu1 %v1033_v53  ;;  %v1030_v58 = vsel %vm256_vm1, %v1010_v30, 0.0 }
 0x38a   : > { %v1013_v59 = vmul.f32 %v997_v4, %v997_v4  ;;  %1031 = vadd.xlane.f32.xlu0 %v1030_v58 }
 0x38b   : > { %v1012_v57 = vmul.f32 %v996_v3, %v996_v3  ;;  %v1403_v18 = vpop.f32.mrb[0].mxu1 }
 0x38c   : > { %983 = vst.msk [vmem:[%s2086_s26 + $0x38] sm:$0xff] %vm256_vm1, %v1403_v18  ;;  %v999_v6 = vsub.f32 %v1403_v18, %v1700_v8  ;;  %v927_v19 = vpop.f32.mrb[1].mxu1  ;;  %v1039_v49 = vsel %vm256_vm1, %v1013_v59, 0.0 }
 0x38d   : > { %982 = vst.msk [vmem:[%s2086_s26 + $0x30] sm:$0xff] %vm256_vm1, %v927_v19  ;;  %v998_v5 = vsub.f32 %v927_v19, %v1693_v7  ;;  %1040 = vadd.xlane.f32.xlu1 %v1039_v49  ;;  %v1036_v35 = vsel %vm256_vm1, %v1012_v57, 0.0 }
 0x38e   : > { %v1015_v42 = vmul.f32 %v999_v6, %v999_v6  ;;  %1037 = vadd.xlane.f32.xlu0 %v1036_v35 }
 0x38f   : > { %v1014_v45 = vmul.f32 %v998_v5, %v998_v5  ;;  %v1406_v28 = vpop.f32.mrb[2].mxu1 }
 0x390   : > { %985 = vst.msk [vmem:[%s2086_s26 + $0x48] sm:$0xff] %vm256_vm1, %v1406_v28  ;;  %v1001_v8 = vsub.f32 %v1406_v28, %v1710_v10  ;;  %v937_v60 = vpop.f32.mrb[3].mxu1  ;;  %v1045_v47 = vsel %vm256_vm1, %v1015_v42, 0.0 }
 0x391   : > { %984 = vst.msk [vmem:[%s2086_s26 + $0x40] sm:$0xff] %vm256_vm1, %v937_v60  ;;  %v1000_v7 = vsub.f32 %v937_v60, %v1703_v9  ;;  %1046 = vadd.xlane.f32.xlu1 %v1045_v47  ;;  %v1042_v26 = vsel %vm256_vm1, %v1014_v45, 0.0 }
 0x392   : > { %v1017_v27 = vmul.f32 %v1001_v8, %v1001_v8  ;;  %1043 = vadd.xlane.f32.xlu0 %v1042_v26 }
 0x393   : > { %v1016_v61 = vmul.f32 %v1000_v7, %v1000_v7  ;;  %v1409_v41 = vpop.f32.mrb[4].mxu1 }
 0x394   : > { %987 = vst.msk [vmem:[%s2086_s26 + $0x58] sm:$0xff] %vm256_vm1, %v1409_v41  ;;  %v1003_v10 = vsub.f32 %v1409_v41, %v1720_v12  ;;  %v947_v29 = vpop.f32.mrb[5].mxu1  ;;  %v1051_v0 = vsel %vm256_vm1, %v1017_v27, 0.0 }
 0x395   : > { %986 = vst.msk [vmem:[%s2086_s26 + $0x50] sm:$0xff] %vm256_vm1, %v947_v29  ;;  %v1002_v9 = vsub.f32 %v947_v29, %v1713_v11  ;;  %1052 = vadd.xlane.f32.xlu1 %v1051_v0  ;;  %v1048_v38 = vsel %vm256_vm1, %v1016_v61, 0.0 }
 0x396   : > { %v1019_v17 = vmul.f32 %v1003_v10, %v1003_v10  ;;  %1049 = vadd.xlane.f32.xlu0 %v1048_v38 }
 0x397   : > { %v1018_v39 = vmul.f32 %v1002_v9, %v1002_v9  ;;  %v1412_v55 = vpop.f32.mrb[6].mxu1 }
 0x398   : > { %989 = vst.msk [vmem:[%s2086_s26 + $0x68] sm:$0xff] %vm256_vm1, %v1412_v55  ;;  %v1005_v12 = vsub.f32 %v1412_v55, %v1730_v14  ;;  %v957_v54 = vpop.f32.mrb[7].mxu1  ;;  %v1057_v56 = vsel %vm256_vm1, %v1019_v17, 0.0 }
 0x399   : > { %988 = vst.msk [vmem:[%s2086_s26 + $0x60] sm:$0xff] %vm256_vm1, %v957_v54  ;;  %v1004_v11 = vsub.f32 %v957_v54, %v1723_v13  ;;  %1058 = vadd.xlane.f32.xlu1 %v1057_v56  ;;  %v1054_v24 = vsel %vm256_vm1, %v1018_v39, 0.0 }
 0x39a   : > { %v1021_v22 = vmul.f32 %v1005_v12, %v1005_v12  ;;  %1055 = vadd.xlane.f32.xlu0 %v1054_v24 }
 0x39b   : > { %v1020_v23 = vmul.f32 %v1004_v11, %v1004_v11  ;;  %v1415_v36 = vpop.f32.mrb[8].mxu1 }
 0x39c   : > { %991 = vst.msk [vmem:[%s2086_s26 + $0x78] sm:$0xff] %vm256_vm1, %v1415_v36  ;;  %v1007_v52 = vsub.f32 %v1415_v36, %v1740_v16  ;;  %v967_v25 = vpop.f32.mrb[9].mxu1  ;;  %v1063_v14 = vsel %vm256_vm1, %v1021_v22, 0.0 }
 0x39d   : > { %990 = vst.msk [vmem:[%s2086_s26 + $0x70] sm:$0xff] %vm256_vm1, %v967_v25  ;;  %v1006_v34 = vsub.f32 %v967_v25, %v1733_v15  ;;  %1064 = vadd.xlane.f32.xlu1 %v1063_v14  ;;  %v1060_v13 = vsel %vm256_vm1, %v1020_v23, 0.0 }
 0x39e   : > { %v1023_v20 = vmul.f32 %v1007_v52, %v1007_v52  ;;  %1061 = vadd.xlane.f32.xlu0 %v1060_v13 }
 0x39f   : > { %v1022_v37 = vmul.f32 %v1006_v34, %v1006_v34 }
 0x3a0   : > { %v1069_v21 = vsel %vm256_vm1, %v1023_v20, 0.0 }
 0x3a1   : > { %1070 = vadd.xlane.f32.xlu1 %v1069_v21  ;;  %v1066_v63 = vsel %vm256_vm1, %v1022_v37, 0.0 }
 0x3a2   : > { %1067 = vadd.xlane.f32.xlu0 %v1066_v63 }
 0x412   : > { %v1029_v16 = vpop.xlane.xlu1 %1028 }
 0x413   : > { %v1026_v31 = vpop.xlane.xlu0 %1025  ;;  %v1074_v51 = vsel %vm1072_vm5, %v1029_v16, 0.0 }
 0x414   : > { %v1073_v40 = vsel %vm1072_vm5, %v1026_v31, 0.0 }
 0x415   : > { %v1075_v44 = vadd.f32 %v1074_v51, %v1073_v40 }
 0x416   : > { %v1035_v15 = vpop.xlane.xlu1 %1034 }
 0x417   : > { %v1032_v32 = vpop.xlane.xlu0 %1031  ;;  %v1078_v48 = vsel %vm1072_vm5, %v1035_v15, 0.0 }
 0x418   : > { %v1076_v62 = vsel %vm1072_vm5, %v1032_v32, 0.0 }
 0x419   : > { %v1077_v43 = vadd.f32 %v1076_v62, %v1075_v44 }
 0x41a   : > { %v1041_v2 = vpop.xlane.xlu1 %1040 }
 0x41b   : > { %v1079_v33 = vadd.f32 %v1078_v48, %v1077_v43  ;;  %v1038_v1 = vpop.xlane.xlu0 %1037  ;;  %v1082_v4 = vsel %vm1072_vm5, %v1041_v2, 0.0 }
 0x41c   : > { %v1080_v30 = vsel %vm1072_vm5, %v1038_v1, 0.0 }
 0x41d   : > { %v1081_v46 = vadd.f32 %v1080_v30, %v1079_v33 }
 0x41e   : > { %v1047_v50 = vpop.xlane.xlu1 %1046 }
 0x41f   : > { %v1083_v53 = vadd.f32 %v1082_v4, %v1081_v46  ;;  %v1044_v3 = vpop.xlane.xlu0 %1043  ;;  %v1086_v57 = vsel %vm1072_vm5, %v1047_v50, 0.0 }
 0x420   : > { %v1084_v58 = vsel %vm1072_vm5, %v1044_v3, 0.0 }
 0x421   : > { %v1085_v59 = vadd.f32 %v1084_v58, %v1083_v53 }
 0x422   : > { %v1053_v18 = vpop.xlane.xlu1 %1052 }
 0x423   : > { %v1087_v6 = vadd.f32 %v1086_v57, %v1085_v59  ;;  %v1050_v19 = vpop.xlane.xlu0 %1049  ;;  %v1090_v35 = vsel %vm1072_vm5, %v1053_v18, 0.0 }
 0x424   : > { %v1088_v49 = vsel %vm1072_vm5, %v1050_v19, 0.0 }
 0x425   : > { %v1089_v5 = vadd.f32 %v1088_v49, %v1087_v6 }
 0x426   : > { %v1059_v42 = vpop.xlane.xlu1 %1058 }
 0x427   : > { %v1091_v45 = vadd.f32 %v1090_v35, %v1089_v5  ;;  %v1056_v28 = vpop.xlane.xlu0 %1055  ;;  %v1094_v47 = vsel %vm1072_vm5, %v1059_v42, 0.0 }
 0x428   : > { %v1092_v8 = vsel %vm1072_vm5, %v1056_v28, 0.0 }
 0x429   : > { %v1093_v60 = vadd.f32 %v1092_v8, %v1091_v45 }
 0x42a   : > { %v1065_v7 = vpop.xlane.xlu1 %1064 }
 0x42b   : > { %v1095_v26 = vadd.f32 %v1094_v47, %v1093_v60  ;;  %v1062_v27 = vpop.xlane.xlu0 %1061  ;;  %v1098_v10 = vsel %vm1072_vm5, %v1065_v7, 0.0 }
 0x42c   : > { %v1096_v61 = vsel %vm1072_vm5, %v1062_v27, 0.0 }
 0x42d   : > { %v1097_v41 = vadd.f32 %v1096_v61, %v1095_v26 }
 0x42e   : > { %v1071_v29 = vpop.xlane.xlu1 %1070 }
 0x42f   : > { %v1099_v0 = vadd.f32 %v1098_v10, %v1097_v41  ;;  %v1068_v9 = vpop.xlane.xlu0 %1067  ;;  %v1102_v39 = vsel %vm1072_vm5, %v1071_v29, 0.0 }
 0x430   : > { %v1100_v38 = vsel %vm1072_vm5, %v1068_v9, 0.0 }
 0x431   : > { %v1101_v17 = vadd.f32 %v1100_v38, %v1099_v0 }
 0x433   : > { %v1103_v55 = vadd.f32 %v1102_v39, %v1101_v17 }
 0x435   : > { %1104 = vadd.xlane.f32.xlu0 %v1103_v55 }
 0x4c2   : > { %v1105_v12 = vpop.xlane.xlu0 %1104 }
 0x4c3   : > { %v1106_v54 = vrot.slane %v1105_v12, 4 }
 0x4c5   : > { %v1107_v56 = vadd.f32 %v1106_v54, %v1105_v12 }
 0x4c7   : > { %v1108_v11 = vrot.slane %v1107_v56, 2 }
 0x4c9   : > { %v1109_v24 = vadd.f32 %v1108_v11, %v1107_v56 }
 0x4cb   : > { %v1110_v22 = vrot.slane %v1109_v24, 1 }
 0x4cd   : > { %v1111_v23 = vadd.f32 %v1110_v22, %v1109_v24 }
 0x4cf   : > { %1464 = vpush %v1111_v23 }
 0x500   : > { %s1465_s10 = spop %1464 }
 0x501   : > { %v1113_v36 = vstv %s1465_s10 }
 0x502   : > { %1114 = vst [vmem:[%s226_s30] sm:$0xff] %v1113_v36 }
 0x503   : > { %1519 = shalt.err (!%p1516_p3)
}
 0x504   : > { %s1520_s23 = scalar_lea.hbm %s2175_s13, 128  ;;  %s1524_s7 = scalar_lea.hbm %s2220_s5, 512 }
 0x505   : > { %p1521_p4 = scmp.ne.s32.totalorder %s2175_s13, %s1520_s23  ;;  %p1525_p9 = scmp.lt.u32.totalorder %s2175_s13, %s2220_s5 }
 0x506   : > { %p1526_p10 = scmp.lt.u32.totalorder %s1524_s7, %s1520_s23  ;;  %p1528_p12 = scmp.lt.u32.totalorder %s1520_s23, %s2175_s13 }
 0x507   : > { %p1522_p7 = pnand %p1521_p4, %p1640_p5 }
 0x508   : > { %p1527_p11 = por %p1526_p10, %p1525_p9 }
 0x509   : > { %p1523_p8 = pneg %p1522_p7 }
 0x50a   : > { %p1529_p13 = por %p1528_p12, %p1527_p11 }
 0x50c   : > { %p1530_p0 = pnand %p1529_p13, %p1523_p8 }
 0x50e   : > { %1533 = shalt.err (!%p1530_p0)
}
 0x50f   : > { %1466 = dma.vmem_to_hbm [thread:$0]  (%p1640_p5), %s2170_s6, 128, %s2175_s13, %s1121_s14  }
 0x510 PF: > { %p1472_p1 = scmp.ge.s32.totalorder %s1568_s21, 2  ;;  %s1158_s9 = sand.u32 1, %s1556_s18  }
 0x511   : > { %s1159_s10 = scalar_lea.sflag [#allocation3], %s1158_s9 }
 0x512   : > { %p1469_p2 = pnand %p1472_p1, %p1644_p6 }
 0x514   : > { %1551 = dma.done.wait (!%p1469_p2), %s1159_s10, 128  }
 0x515   : > { %1553 = vsyncadd (!%p1469_p2), %s1159_s10, 4294967168  ;;  %p16_p3 = scmp.ge.s32.totalorder %s1627_s24, 6   ;;  %s2223_s18 = smov %s1560_s19 }
 0x516   : > { %s2224_s19 = smov %s1564_s20  ;;  %s2225_s20 = smov %s1638_s27 }
 0x517   : > { %s2226_s21 = smov %s1627_s24  ;;  %18 = sbr.rel (!%p16_p3) target bundleno = 3 (0x3), region = 83 }
 0x51e   :  { %1164 = vsyncpa [#allocation3], 1 }
 0x51f   :  { %1166 = vsyncpa [#allocation3 + $0x1], 1 }

// kernel: tpu_custom_call.1
= control target key start
LH: loop header
LB: loop body
LE: loop exit
PB: predicated region body
PF: predicated region fallthrough
CT: control target
= control target key end

     0   :  { %11 = vsyncpa [#allocation3], 0  ;;  %s2215_s0 = inlined_call_operand.vmem [shape: f32[512,4], index: 0, kind: input, shape index: {}]   ;;  %s2216_s1 = inlined_call_operand.vmem [shape: f32[4,128], index: 1, kind: input, shape index: {}]   ;;  %s2217_s2 = inlined_call_operand.vmem [shape: f32[128,4], index: 2, kind: input, shape index: {}]   ;;  %s2218_s3 = inlined_call_operand.vmem [shape: f32[1,128], index: 3, kind: input, shape index: {}]   ;;  %s2219_s4 = inlined_call_operand.vmem [shape: f32[512,4], index: 4, kind: output, shape index: {0}]   ;;  %s2220_s5 = inlined_call_operand.hbm [shape: f32[4,8,128], index: 5, kind: output, shape index: {1}]  }
   0x1   :  { %13 = vsyncpa [#allocation3 + $0x1], 0  ;;  %s1602_s18 = smov 0   ;;  %s1604_s19 = smov 0  }
   0x2   :  { %s1606_s20 = smov 0   ;;  %s1608_s21 = smov 0  }
   0x3 LB: > { %s1623_s22 = sadd.s32 4294967295, %s1568_s21   ;;  %s1222_s23 = sadd.s32 4294967294, %s1568_s21   ;;  %s1568_s21 = sphi %s1608_s21, %s2226_s21   ;;  %s1564_s20 = sphi %s1606_s20, %s2225_s20   ;;  %s1560_s19 = sphi %s1604_s19, %s2224_s19   ;;  %s1556_s18 = sphi %s1602_s18, %s2223_s18  }
   0x4   : > { %s1627_s24 = sadd.s32 1, %s1568_s21   ;;  %s141_s25 = sadd.s32 1, %s1564_s20 }
   0x5   : > { %s138_s26 = ssub.s32 %s1568_s21, %s1627_s24  ;;  %p151_p0 = scmp.ne.s32.totalorder %s1564_s20, %s1560_s19 }
   0x6   : > { %p139_p1 = scmp.eq.s32.totalorder %s138_s26, 0  ;;  %p152_p2 = scmp.eq.s32.totalorder %s1623_s22, 3 }
   0x7   : > { %p157_p3 = scmp.ne.s32.totalorder %s1560_s19, %s1556_s18  ;;  %p158_p4 = scmp.eq.s32.totalorder %s1222_s23, 3 }
   0x8   : > { %s1638_s27 = scalar_select %p139_p1, %s1564_s20, %s141_s25  }
   0x9   : > { %p1640_p5 = por %p152_p2, %p151_p0  ;;  %p1644_p6 = por %p158_p4, %p157_p3 }
   0xa   : > { %p1225_p7 = scmp.ge.s32.totalorder %s1568_s21, 1  ;;  %p194_p8 = scmp.lt.s32.totalorder %s1568_s21, 5 }
   0xc   : > { %p195_p9 = pnand %p1225_p7, %p194_p8 }
   0xd   : > { %v255_v0 = vld [vmem:[%s2216_s1] sm:$0xf] (!%p195_p9)  ;;  %vm305_vm0 = vcmask (!%p195_p9), 1043456   ;;  %s1227_s7 = sshll.u32 (!%p195_p9), %s1623_s22, 4  ;;  %vm256_vm1 = vcmask (!%p195_p9), 31744   ;;  %v509_v50 = vlaneseq (!%p195_p9)  ;;  %s1282_s9 = sshll.u32 (!%p195_p9), %s1623_s22, 7 }
   0xe   : > { %198 = sbr.rel (%p195_p9) target bundleno = 1296 (0x510), region = 36  ;;  %1334 = vmatprep.subr.msk.mxu0 (!%p195_p9), %vm305_vm0, %v255_v0  ;;  %p228_p10 = scmp.lt.s32.totalorder (!%p195_p9), %s1227_s7, 63  ;;  %v1248_v17 = vld [vmem:[%s2218_s3] ss:$0 sm:$0xff] (!%p195_p9) }
   0xf   : > { %1335 = vmatpush3.msk.msra.mxu0 (!%p195_p9), %vm305_vm0, %v255_v0  ;;  %v1780_v51 = vand.u32 (!%p195_p9), 127, %v509_v50  ;;  %s2175_s13 = scalar_lea.hbm (!%p195_p9), %s2220_s5, %s1282_s9  ;;  %s1571_s22 = smov (!%p195_p9), [#allocation2]  }
  0x10   : > { %s1510_s16 = sshll.u32 (!%p195_p9), %s1571_s22, 4  ;;  %s1511_s16 = int_to_ptr.vmem [resolvable:$false] %s1510_s16 }
  0x11   : > { %s1512_s17 = scalar_lea.vmem (!%p195_p9), %s1511_s16, 256 }
  0x15   : > { %s2228_s7 = smov (!%p228_p10, %s1227_s7), 63 }
  0x16   : > { %s1228_s8 = sshll.u32 %s2228_s7, 3  ;;  %s224_s7 = sand.u32 1, %s1560_s19  }
  0x17   : > { %s1662_s11 = scalar_lea.vmem %s2215_s0, %s1228_s8  ;;  %s2086_s26 = scalar_lea.vmem %s2219_s4, %s1228_s8 }
  0x18   : > { %v1665_v1 = vld [vmem:[%s1662_s11] sm:$0xff]  ;;  %v1668_v2 = vld [vmem:[%s1662_s11 + $0x8] sm:$0xff]  ;;  %v1671_v3 = vld [vmem:[%s1662_s11 + $0x10] sm:$0xff]  ;;  %s1226_s8 = sshll.u32 %s224_s7, 3  ;;  %s1121_s14 = scalar_lea.sflag [#allocation3], %s224_s7 }
  0x19   : > { %1336 = vmatprep.mubr.msk.f32.mxu0 %vm256_vm1, %v1665_v1  ;;  %v1680_v4 = vld [vmem:[%s1662_s11 + $0x18] sm:$0xff]  ;;  %v1683_v5 = vld [vmem:[%s1662_s11 + $0x20] sm:$0xff]  ;;  %v1690_v6 = vld [vmem:[%s1662_s11 + $0x28] sm:$0xff]  ;;  %s226_s30 = scalar_lea.vmem [#allocation2], %s1226_s8 }
  0x1a   : > { %1337 = vmatmul.mubr.msk.f32.vlgmr.msra.gmra.mrb[0].mxu0 %vm256_vm1, %v1668_v2  ;;  %v1693_v7 = vld [vmem:[%s1662_s11 + $0x30] sm:$0xff]  ;;  %v1700_v8 = vld [vmem:[%s1662_s11 + $0x38] sm:$0xff]  ;;  %v1703_v9 = vld [vmem:[%s1662_s11 + $0x40] sm:$0xff]  ;;  %s1138_s6 = sshll.u32 %s226_s30, 4  ;;  %s2170_s6 = int_to_ptr.vmem [resolvable:$true] %s1138_s6 }
  0x1b   : > { %1339 = vmatprep.mubr.msk.f32.mxu0 %vm256_vm1, %v1671_v3  ;;  %v1710_v10 = vld [vmem:[%s1662_s11 + $0x48] sm:$0xff]  ;;  %v1713_v11 = vld [vmem:[%s1662_s11 + $0x50] sm:$0xff]  ;;  %v1720_v12 = vld [vmem:[%s1662_s11 + $0x58] sm:$0xff]  ;;  %s1506_s15 = scalar_lea.vmem %s2170_s6, 128  ;;  %p1513_p0 = scmp.lt.s32.totalorder %s2170_s6, %s1511_s16 }
  0x1c   : > { %v1723_v13 = vld [vmem:[%s1662_s11 + $0x60] sm:$0xff]  ;;  %v1730_v14 = vld [vmem:[%s1662_s11 + $0x68] sm:$0xff]  ;;  %v1733_v15 = vld [vmem:[%s1662_s11 + $0x70] sm:$0xff]  ;;  %p1507_p11 = scmp.ne.s32.totalorder %s2170_s6, %s1506_s15  ;;  %p1514_p1 = scmp.lt.s32.totalorder %s1512_s17, %s1506_s15 }
  0x1d   : > { %v1740_v16 = vld [vmem:[%s1662_s11 + $0x78] sm:$0xff] }
  0x1e   : > { %1340 = vmatmul.mubr.msk.f32.gmra.mrb[2].mxu0 %vm256_vm1, %v1680_v4  ;;  %p1508_p12 = pnand %p1507_p11, %p1640_p5  ;;  %p1515_p2 = por %p1514_p1, %p1513_p0 }
  0x1f   : > { %1342 = vmatprep.mubr.msk.f32.mxu0 %vm256_vm1, %v1683_v5 }
  0x20   : > { %p1509_p13 = pneg %p1508_p12 }
  0x22   : > { %1343 = vmatmul.mubr.msk.f32.gmra.mrb[4].mxu0 %vm256_vm1, %v1690_v6  ;;  %p1516_p3 = pnand %p1515_p2, %p1509_p13 }
  0x23   : > { %1345 = vmatprep.mubr.msk.f32.mxu0 %vm256_vm1, %v1693_v7 }
  0x26   : > { %1346 = vmatmul.mubr.msk.f32.gmra.mrb[6].mxu0 %vm256_vm1, %v1700_v8 }
  0x27   : > { %1348 = vmatprep.mubr.msk.f32.mxu0 %vm256_vm1, %v1703_v9 }
  0x2a   : > { %1349 = vmatmul.mubr.msk.f32.gmra.mrb[8].mxu0 %vm256_vm1, %v1710_v10 }
  0x2b   : > { %1351 = vmatprep.mubr.msk.f32.mxu0 %vm256_vm1, %v1713_v11 }
  0x2e   : > { %1352 = vmatmul.mubr.msk.f32.gmra.mrb[10].mxu0 %vm256_vm1, %v1720_v12 }
  0x2f   : > { %1354 = vmatprep.mubr.msk.f32.mxu0 %vm256_vm1, %v1723_v13 }
  0x32   : > { %1355 = vmatmul.mubr.msk.f32.gmra.mrb[12].mxu0 %vm256_vm1, %v1730_v14 }
  0x33   : > { %1357 = vmatprep.mubr.msk.f32.mxu0 %vm256_vm1, %v1733_v15 }
  0x36   : > { %1358 = vmatmul.mubr.msk.f32.gmra.mrb[14].mxu0 %vm256_vm1, %v1740_v16 }
  0xed   : > { %v1338_v18 = vpop.f32.mrb[0].mxu0 }
  0xee   : > { %v375_v19 = vpop.f32.mrb[1].mxu0  ;;  %v462_v23 = vsub.f32 %v1248_v17, %v1338_v18 }
  0xef   : > { %v461_v20 = vsub.f32 %v1248_v17, %v375_v19 }
  0xf1   : > { %477 = vmin.xlane.f32.xlu0 %v461_v20  ;;  %v1341_v21 = vpop.f32.mrb[2].mxu0 }
  0xf2   : > { %v385_v22 = vpop.f32.mrb[3].mxu0  ;;  %v464_v27 = vsub.f32 %v1248_v17, %v1341_v21 }
  0xf3   : > { %v463_v24 = vsub.f32 %v1248_v17, %v385_v22 }
  0xf5   : > { %479 = vmin.xlane.f32.xlu0 %v462_v23  ;;  %481 = vmin.xlane.f32.xlu1 %v463_v24  ;;  %v1344_v25 = vpop.f32.mrb[4].mxu0 }
  0xf6   : > { %v395_v26 = vpop.f32.mrb[5].mxu0  ;;  %v1747_v31 = vsub.f32 %v1248_v17, %v1344_v25 }
  0xf7   : > { %v465_v28 = vsub.f32 %v1248_v17, %v395_v26 }
  0xf9   : > { %483 = vmin.xlane.f32.xlu1 %v464_v27  ;;  %485 = vmin.xlane.f32.xlu0 %v465_v28  ;;  %v1347_v29 = vpop.f32.mrb[6].mxu0 }
  0xfa   : > { %v405_v30 = vpop.f32.mrb[7].mxu0  ;;  %v1753_v35 = vsub.f32 %v1248_v17, %v1347_v29 }
  0xfb   : > { %v1749_v32 = vsub.f32 %v1248_v17, %v405_v30 }
  0xfd   : > { %487 = vmin.xlane.f32.xlu1 %v1747_v31  ;;  %489 = vmin.xlane.f32.xlu0 %v1749_v32  ;;  %v1350_v33 = vpop.f32.mrb[8].mxu0 }
  0xfe   : > { %v415_v34 = vpop.f32.mrb[9].mxu0  ;;  %v1759_v39 = vsub.f32 %v1248_v17, %v1350_v33 }
  0xff   : > { %v1755_v36 = vsub.f32 %v1248_v17, %v415_v34 }
 0x101   : > { %491 = vmin.xlane.f32.xlu1 %v1753_v35  ;;  %493 = vmin.xlane.f32.xlu0 %v1755_v36  ;;  %v1353_v37 = vpop.f32.mrb[10].mxu0 }
 0x102   : > { %v425_v38 = vpop.f32.mrb[11].mxu0  ;;  %v1765_v43 = vsub.f32 %v1248_v17, %v1353_v37 }
 0x103   : > { %v1761_v40 = vsub.f32 %v1248_v17, %v425_v38 }
 0x105   : > { %495 = vmin.xlane.f32.xlu1 %v1759_v39  ;;  %497 = vmin.xlane.f32.xlu0 %v1761_v40  ;;  %v1356_v41 = vpop.f32.mrb[12].mxu0 }
 0x106   : > { %v435_v42 = vpop.f32.mrb[13].mxu0  ;;  %v1771_v47 = vsub.f32 %v1248_v17, %v1356_v41 }
 0x107   : > { %v1767_v44 = vsub.f32 %v1248_v17, %v435_v42 }
 0x109   : > { %499 = vmin.xlane.f32.xlu1 %v1765_v43  ;;  %501 = vmin.xlane.f32.xlu0 %v1767_v44  ;;  %v1359_v45 = vpop.f32.mrb[14].mxu0 }
 0x10a   : > { %v445_v46 = vpop.f32.mrb[15].mxu0  ;;  %v1777_v49 = vsub.f32 %v1248_v17, %v1359_v45 }
 0x10b   : > { %v1773_v48 = vsub.f32 %v1248_v17, %v445_v46 }
 0x10d   : > { %503 = vmin.xlane.f32.xlu1 %v1771_v47  ;;  %505 = vmin.xlane.f32.xlu0 %v1773_v48 }
 0x111   : > { %507 = vmin.xlane.f32.xlu1 %v1777_v49 }
 0x17e   : > { %v478_v52 = vpop.xlane.xlu0 %477 }
 0x17f   : > { %vm511_vm2 = vcmp.le.f32.partialorder %v461_v20, %v478_v52 }
 0x180   : > { %v1783_v53 = vsel %vm511_vm2, %v1780_v51, 128 }
 0x181   : > { %v544_v54 = vshra.s32 %v1783_v53, 16 }
 0x182   : > { %v480_v55 = vpop.xlane.xlu0 %479  ;;  %v482_v56 = vpop.xlane.xlu1 %481 }
 0x183   : > { %vm512_vm3 = vcmp.le.f32.partialorder %v462_v23, %v480_v55  ;;  %vm513_vm4 = vcmp.le.f32.partialorder %v463_v24, %v482_v56  ;;  %v1786_v57 = vcvt.s32.f32 %v544_v54 }
 0x184   : > { %v1789_v58 = vsel %vm512_vm3, %v1780_v51, 128  ;;  %v1792_v59 = vsel %vm513_vm4, %v1780_v51, 128 }
 0x185   : > { %547 = vmin.xlane.f32.xlu0 %v1786_v57  ;;  %v558_v60 = vshra.s32 %v1789_v58, 16  ;;  %v572_v61 = vshra.s32 %v1792_v59, 16 }
 0x186   : > { %v484_v62 = vpop.xlane.xlu1 %483  ;;  %v486_v63 = vpop.xlane.xlu0 %485 }
 0x187   : > { %vm514_vm5 = vcmp.le.f32.partialorder %v464_v27, %v484_v62  ;;  %vm515_vm6 = vcmp.le.f32.partialorder %v465_v28, %v486_v63  ;;  %v1797_v0 = vcvt.s32.f32 %v558_v60  ;;  %v1799_v17 = vcvt.s32.f32 %v572_v61 }
 0x188   : > { %v1802_v18 = vsel %vm514_vm5, %v1780_v51, 128  ;;  %v1805_v19 = vsel %vm515_vm6, %v1780_v51, 128 }
 0x189   : > { %561 = vmin.xlane.f32.xlu1 %v1797_v0  ;;  %575 = vmin.xlane.f32.xlu0 %v1799_v17  ;;  %v586_v20 = vshra.s32 %v1802_v18, 16  ;;  %v600_v21 = vshra.s32 %v1805_v19, 16 }
 0x18a   : > { %v488_v22 = vpop.xlane.xlu1 %487  ;;  %v490_v23 = vpop.xlane.xlu0 %489 }
 0x18b   : > { %vm516_vm7 = vcmp.le.f32.partialorder %v1747_v31, %v488_v22  ;;  %vm517_vm8 = vcmp.le.f32.partialorder %v1749_v32, %v490_v23  ;;  %v1813_v24 = vcvt.s32.f32 %v586_v20  ;;  %v1815_v25 = vcvt.s32.f32 %v600_v21 }
 0x18c   : > { %v1818_v26 = vsel %vm516_vm7, %v1780_v51, 128  ;;  %v1821_v27 = vsel %vm517_vm8, %v1780_v51, 128 }
 0x18d   : > { %589 = vmin.xlane.f32.xlu1 %v1813_v24  ;;  %603 = vmin.xlane.f32.xlu0 %v1815_v25  ;;  %v614_v28 = vshra.s32 %v1818_v26, 16  ;;  %v628_v29 = vshra.s32 %v1821_v27, 16 }
 0x18e   : > { %v492_v30 = vpop.xlane.xlu1 %491  ;;  %v494_v31 = vpop.xlane.xlu0 %493 }
 0x18f   : > { %vm518_vm9 = vcmp.le.f32.partialorder %v1753_v35, %v492_v30  ;;  %vm519_vm10 = vcmp.le.f32.partialorder %v1755_v36, %v494_v31  ;;  %v1829_v32 = vcvt.s32.f32 %v614_v28  ;;  %v1831_v33 = vcvt.s32.f32 %v628_v29 }
 0x190   : > { %v1834_v34 = vsel %vm518_vm9, %v1780_v51, 128  ;;  %v1837_v37 = vsel %vm519_vm10, %v1780_v51, 128 }
 0x191   : > { %617 = vmin.xlane.f32.xlu1 %v1829_v32  ;;  %631 = vmin.xlane.f32.xlu0 %v1831_v33  ;;  %v642_v38 = vshra.s32 %v1834_v34, 16  ;;  %v656_v35 = vshra.s32 %v1837_v37, 16 }
 0x192   : > { %v496_v41 = vpop.xlane.xlu1 %495  ;;  %v498_v36 = vpop.xlane.xlu0 %497 }
 0x193   : > { %vm520_vm11 = vcmp.le.f32.partialorder %v1759_v39, %v496_v41  ;;  %vm521_vm12 = vcmp.le.f32.partialorder %v1761_v40, %v498_v36  ;;  %v1845_v42 = vcvt.s32.f32 %v642_v38  ;;  %v1847_v45 = vcvt.s32.f32 %v656_v35  ;;  %v816_v41 = vld [vmem:[%s2217_s2 + $0x8] sm:$0xff]  ;;  %v817_v36 = vld [vmem:[%s2217_s2 + $0x10] sm:$0xff] }
 0x194   : > { %v1850_v46 = vsel %vm520_vm11, %v1780_v51, 128  ;;  %v1853_v50 = vsel %vm521_vm12, %v1780_v51, 128 }
 0x195   : > { %645 = vmin.xlane.f32.xlu1 %v1845_v42  ;;  %659 = vmin.xlane.f32.xlu0 %v1847_v45  ;;  %v670_v52 = vshra.s32 %v1850_v46, 16  ;;  %v684_v39 = vshra.s32 %v1853_v50, 16 }
 0x196   : > { %v500_v54 = vpop.xlane.xlu1 %499  ;;  %v502_v40 = vpop.xlane.xlu0 %501 }
 0x197   : > { %vm522_vm13 = vcmp.le.f32.partialorder %v1765_v43, %v500_v54  ;;  %vm523_vm14 = vcmp.le.f32.partialorder %v1767_v44, %v502_v40  ;;  %v1861_v55 = vcvt.s32.f32 %v670_v52  ;;  %v1863_v56 = vcvt.s32.f32 %v684_v39  ;;  %v818_v39 = vld [vmem:[%s2217_s2 + $0x18] sm:$0xff]  ;;  %v819_v40 = vld [vmem:[%s2217_s2 + $0x20] sm:$0xff] }
 0x198   : > { %v1866_v60 = vsel %vm522_vm13, %v1780_v51, 128  ;;  %v1869_v61 = vsel %vm523_vm14, %v1780_v51, 128  ;;  %v1420_v54 = vpack.c.bf16 %v818_v39, %v817_v36  ;;  %v557_v39 = vand.u32 65535, %v1789_v58 }
 0x199   : > { %673 = vmin.xlane.f32.xlu1 %v1861_v55  ;;  %687 = vmin.xlane.f32.xlu0 %v1863_v56  ;;  %v698_v62 = vshra.s32 %v1866_v60, 16  ;;  %v712_v43 = vshra.s32 %v1869_v61, 16 }
 0x19a   : > { %v504_v63 = vpop.xlane.xlu1 %503  ;;  %v506_v44 = vpop.xlane.xlu0 %505 }
 0x19b   : > { %vm524_vm15 = vcmp.le.f32.partialorder %v1771_v47, %v504_v63  ;;  %vm525_vm0 = vcmp.le.f32.partialorder %v1773_v48, %v506_v44  ;;  %v1877_v20 = vcvt.s32.f32 %v698_v62  ;;  %v1879_v21 = vcvt.s32.f32 %v712_v43  ;;  %v820_v62 = vld [vmem:[%s2217_s2 + $0x28] sm:$0xff]  ;;  %v821_v63 = vld [vmem:[%s2217_s2 + $0x30] sm:$0xff]  ;;  %v822_v44 = vld [vmem:[%s2217_s2 + $0x38] sm:$0xff] }
 0x19c   : > { %v1882_v22 = vsel %vm524_vm15, %v1780_v51, 128  ;;  %v1885_v23 = vsel %vm525_vm0, %v1780_v51, 128  ;;  %v1424_v43 = vpack.c.bf16 %v820_v62, %v819_v40 }
 0x19d   : > { %701 = vmin.xlane.f32.xlu1 %v1877_v20  ;;  %715 = vmin.xlane.f32.xlu0 %v1879_v21  ;;  %v726_v28 = vshra.s32 %v1882_v22, 16  ;;  %v740_v47 = vshra.s32 %v1885_v23, 16 }
 0x19e   : > { %v508_v29 = vpop.xlane.xlu1 %507 }
 0x19f   : > { %vm526_vm2 = vcmp.le.f32.partialorder %v1777_v49, %v508_v29  ;;  %v1892_v48 = vcvt.s32.f32 %v726_v28  ;;  %v1894_v30 = vcvt.s32.f32 %v740_v47  ;;  %v815_v49 = vld [vmem:[%s2217_s2] sm:$0xff]  ;;  %v1428_v28 = vpack.c.bf16 %v822_v44, %v821_v63  ;;  %v824_v29 = vld [vmem:[%s2217_s2 + $0x48] sm:$0xff] }
 0x1a0   : > { %v1897_v31 = vsel %vm526_vm2, %v1780_v51, 128  ;;  %v1416_v52 = vpack.c.bf16 %v816_v41, %v815_v49  ;;  %v823_v47 = vld [vmem:[%s2217_s2 + $0x40] sm:$0xff]  ;;  %v825_v49 = vld [vmem:[%s2217_s2 + $0x50] sm:$0xff]  ;;  %v826_v41 = vld [vmem:[%s2217_s2 + $0x58] sm:$0xff]  ;;  %v585_v63 = vand.u32 65535, %v1802_v18  ;;  %v599_v44 = vand.u32 65535, %v1805_v19 }
 0x1a1   : > { %729 = vmin.xlane.f32.xlu1 %v1892_v48  ;;  %743 = vmin.xlane.f32.xlu0 %v1894_v30  ;;  %v754_v38 = vshra.s32 %v1897_v31, 16  ;;  %v1436_v36 = vpack.c.bf16 %v826_v41, %v825_v49  ;;  %v613_v18 = vand.u32 65535, %v1818_v26  ;;  %v627_v19 = vand.u32 65535, %v1821_v27 }
 0x1a2   : > { %1417 = vmatprep.subr.bf16.mxu0 %v1416_v52  ;;  %1448 = vmatprep.subr.bf16.mxu1 %v1416_v52  ;;  %v587_v49 = vcvt.s32.f32 %v585_v63  ;;  %v601_v41 = vcvt.s32.f32 %v599_v44  ;;  %v641_v26 = vand.u32 65535, %v1834_v34  ;;  %v655_v27 = vand.u32 65535, %v1837_v37 }
 0x1a3   : > { %v1902_v35 = vcvt.s32.f32 %v754_v38  ;;  %1419 = vmatpush3.bf16.msra.mxu0 %v1416_v52  ;;  %1456 = vmatpush3.bf16.msra.mxu1 %v1416_v52  ;;  %v1432_v38 = vpack.c.bf16 %v824_v29, %v823_v47  ;;  %v543_v52 = vand.u32 65535, %v1783_v53  ;;  %v559_v53 = vcvt.s32.f32 %v557_v39 }
 0x1a4   : > { %1421 = vmatprep.subr.bf16.mxu0 %v1420_v54  ;;  %1449 = vmatprep.subr.bf16.mxu1 %v1420_v54  ;;  %v615_v39 = vcvt.s32.f32 %v613_v18  ;;  %v669_v34 = vand.u32 65535, %v1850_v46  ;;  %v683_v37 = vand.u32 65535, %v1853_v50  ;;  %v643_v63 = vcvt.s32.f32 %v641_v26 }
 0x1a5   : > { %757 = vmin.xlane.f32.xlu1 %v1902_v35  ;;  %v545_v62 = vcvt.s32.f32 %v543_v52  ;;  %v657_v44 = vcvt.s32.f32 %v655_v27 }
 0x1a7   : > { %1423 = vmatpush3.bf16.msra.mxu0 %v1420_v54  ;;  %1457 = vmatpush3.bf16.msra.mxu1 %v1420_v54  ;;  %v571_v54 = vand.u32 65535, %v1792_v59 }
 0x1a8   : > { %1425 = vmatprep.subr.bf16.mxu0 %v1424_v43  ;;  %1450 = vmatprep.subr.bf16.mxu1 %v1424_v43 }
 0x1a9   : > { %v573_v58 = vcvt.s32.f32 %v571_v54  ;;  %v629_v54 = vcvt.s32.f32 %v627_v19  ;;  %v671_v19 = vcvt.s32.f32 %v669_v34 }
 0x1ab   : > { %1427 = vmatpush3.bf16.msra.mxu0 %v1424_v43  ;;  %1458 = vmatpush3.bf16.msra.mxu1 %v1424_v43 }
 0x1ac   : > { %1429 = vmatprep.subr.bf16.mxu0 %v1428_v28  ;;  %1451 = vmatprep.subr.bf16.mxu1 %v1428_v28 }
 0x1af   : > { %1431 = vmatpush3.bf16.msra.mxu0 %v1428_v28  ;;  %1459 = vmatpush3.bf16.msra.mxu1 %v1428_v28 }
 0x1b0   : > { %1433 = vmatprep.subr.bf16.mxu0 %v1432_v38  ;;  %1452 = vmatprep.subr.bf16.mxu1 %v1432_v38 }
 0x1b3   : > { %1435 = vmatpush3.bf16.msra.mxu0 %v1432_v38  ;;  %1460 = vmatpush3.bf16.msra.mxu1 %v1432_v38 }
 0x1b4   : > { %1437 = vmatprep.subr.bf16.mxu0 %v1436_v36  ;;  %1453 = vmatprep.subr.bf16.mxu1 %v1436_v36 }
 0x1b7   : > { %1439 = vmatpush3.bf16.msra.mxu0 %v1436_v36  ;;  %1461 = vmatpush3.bf16.msra.mxu1 %v1436_v36 }
 0x212   : > { %v1944_v40 = vpop.xlane.xlu0 %547 }
 0x213   : > { %vm549_vm3 = vcmp.eq.f32.partialorder %v1786_v57, %v1944_v40 }
 0x214   : > { %v550_v43 = vsel %vm549_vm3, %v545_v62, inf }
 0x215   : > { %551 = vmin.xlane.f32.xlu0 %v550_v43 }
 0x216   : > { %v1950_v28 = vpop.xlane.xlu1 %561  ;;  %v1952_v47 = vpop.xlane.xlu0 %575 }
 0x217   : > { %vm563_vm4 = vcmp.eq.f32.partialorder %v1797_v0, %v1950_v28  ;;  %vm577_vm5 = vcmp.eq.f32.partialorder %v1799_v17, %v1952_v47 }
 0x218   : > { %v564_v59 = vsel %vm563_vm4, %v559_v53, inf  ;;  %v578_v57 = vsel %vm577_vm5, %v573_v58, inf  ;;  %v697_v58 = vand.u32 65535, %v1866_v60 }
 0x219   : > { %565 = vmin.xlane.f32.xlu1 %v564_v59  ;;  %579 = vmin.xlane.f32.xlu0 %v578_v57  ;;  %v711_v59 = vand.u32 65535, %v1869_v61 }
 0x21a   : > { %v1960_v29 = vpop.xlane.xlu1 %589  ;;  %v1962_v38 = vpop.xlane.xlu0 %603 }
 0x21b   : > { %vm591_vm6 = vcmp.eq.f32.partialorder %v1813_v24, %v1960_v29  ;;  %vm605_vm7 = vcmp.eq.f32.partialorder %v1815_v25, %v1962_v38 }
 0x21c   : > { %v592_v0 = vsel %vm591_vm6, %v587_v49, inf  ;;  %v606_v17 = vsel %vm605_vm7, %v601_v41, inf  ;;  %v685_v49 = vcvt.s32.f32 %v683_v37 }
 0x21d   : > { %593 = vmin.xlane.f32.xlu1 %v592_v0  ;;  %607 = vmin.xlane.f32.xlu0 %v606_v17  ;;  %v725_v0 = vand.u32 65535, %v1882_v22  ;;  %v739_v17 = vand.u32 65535, %v1885_v23  ;;  %v753_v23 = vand.u32 65535, %v1897_v31 }
 0x21e   : > { %v1970_v36 = vpop.xlane.xlu1 %617  ;;  %v1972_v52 = vpop.xlane.xlu0 %631 }
 0x21f   : > { %vm619_vm8 = vcmp.eq.f32.partialorder %v1829_v32, %v1970_v36  ;;  %vm633_vm9 = vcmp.eq.f32.partialorder %v1831_v33, %v1972_v52  ;;  %v827_v32 = vld [vmem:[%s2217_s2 + $0x60] sm:$0xff]  ;;  %v828_v33 = vld [vmem:[%s2217_s2 + $0x68] sm:$0xff]  ;;  %v741_v34 = vcvt.s32.f32 %v739_v17 }
 0x220   : > { %v620_v24 = vsel %vm619_vm8, %v615_v39, inf  ;;  %v634_v25 = vsel %vm633_vm9, %v629_v54, inf  ;;  %v1440_v53 = vpack.c.bf16 %v828_v33, %v827_v32  ;;  %v699_v39 = vcvt.s32.f32 %v697_v58 }
 0x221   : > { %621 = vmin.xlane.f32.xlu1 %v620_v24  ;;  %635 = vmin.xlane.f32.xlu0 %v634_v25  ;;  %v727_v25 = vcvt.s32.f32 %v725_v0  ;;  %v568_v32 = vcvt.f32.s32 %v1950_v28  ;;  %v596_v58 = vcvt.f32.s32 %v1960_v29  ;;  %v638_v29 = vcvt.f32.s32 %v1972_v52 }
 0x222   : > { %v1980_v62 = vpop.xlane.xlu1 %645  ;;  %v1982_v43 = vpop.xlane.xlu0 %659  ;;  %1441 = vmatprep.subr.bf16.mxu0 %v1440_v53  ;;  %1454 = vmatprep.subr.bf16.mxu1 %v1440_v53 }
 0x223   : > { %vm647_vm10 = vcmp.eq.f32.partialorder %v1845_v42, %v1980_v62  ;;  %vm661_vm11 = vcmp.eq.f32.partialorder %v1847_v45, %v1982_v43  ;;  %v829_v42 = vld [vmem:[%s2217_s2 + $0x70] sm:$0xff]  ;;  %v830_v45 = vld [vmem:[%s2217_s2 + $0x78] sm:$0xff]  ;;  %1443 = vmatpush3.bf16.msra.mxu0 %v1440_v53  ;;  %1462 = vmatpush3.bf16.msra.mxu1 %v1440_v53  ;;  %v569_v53 = vshll.u32 %v568_v32, 16  ;;  %v666_v52 = vcvt.f32.s32 %v1982_v43 }
 0x224   : > { %v648_v46 = vsel %vm647_vm10, %v643_v63, inf  ;;  %v662_v50 = vsel %vm661_vm11, %v657_v44, inf  ;;  %v1444_v41 = vpack.c.bf16 %v830_v45, %v829_v42  ;;  %v755_v63 = vcvt.s32.f32 %v753_v23 }
 0x225   : > { %649 = vmin.xlane.f32.xlu1 %v648_v46  ;;  %663 = vmin.xlane.f32.xlu0 %v662_v50  ;;  %v554_v44 = vcvt.f32.s32 %v1944_v40  ;;  %v1570_v40 = vmov 1.0   ;;  %v639_v23 = vshll.u32 %v638_v29, 16  ;;  %v667_v32 = vshll.u32 %v666_v52, 16 }
 0x226   : > { %v1996_v57 = vpop.xlane.xlu1 %673  ;;  %v1998_v18 = vpop.xlane.xlu0 %687  ;;  %1445 = vmatprep.subr.bf16.mxu0 %v1444_v41  ;;  %1455 = vmatprep.subr.bf16.mxu1 %v1444_v41 }
 0x227   : > { %vm675_vm12 = vcmp.eq.f32.partialorder %v1861_v55, %v1996_v57  ;;  %vm689_vm13 = vcmp.eq.f32.partialorder %v1863_v56, %v1998_v18  ;;  %v713_v55 = vcvt.s32.f32 %v711_v59  ;;  %1447 = vmatpush3.bf16.msra.mxu0 %v1444_v41  ;;  %1463 = vmatpush3.bf16.msra.mxu1 %v1444_v41  ;;  %v555_v33 = vshll.u32 %v554_v44, 16 }
 0x228   : > { %v676_v60 = vsel %vm675_vm12, %v671_v19, inf  ;;  %v690_v61 = vsel %vm689_vm13, %v685_v49, inf  ;;  %v610_v59 = vcvt.f32.s32 %v1962_v38  ;;  %v624_v41 = vcvt.f32.s32 %v1970_v36 }
 0x229   : > { %677 = vmin.xlane.f32.xlu1 %v676_v60  ;;  %691 = vmin.xlane.f32.xlu0 %v690_v61  ;;  %v652_v36 = vcvt.f32.s32 %v1980_v62  ;;  %v680_v62 = vcvt.f32.s32 %v1996_v57  ;;  %v694_v43 = vcvt.f32.s32 %v1998_v18 }
 0x22a   : > { %v2012_v26 = vpop.xlane.xlu1 %701  ;;  %v2014_v27 = vpop.xlane.xlu0 %715  ;;  %v611_v61 = vshll.u32 %v610_v59, 16 }
 0x22b   : > { %vm703_vm14 = vcmp.eq.f32.partialorder %v1877_v20, %v2012_v26  ;;  %vm717_vm15 = vcmp.eq.f32.partialorder %v1879_v21, %v2014_v27  ;;  %v653_v44 = vshll.u32 %v652_v36, 16  ;;  %v695_v59 = vshll.u32 %v694_v43, 16 }
 0x22c   : > { %v704_v56 = vsel %vm703_vm14, %v699_v39, inf  ;;  %v718_v22 = vsel %vm717_vm15, %v713_v55, inf  ;;  %v708_v57 = vcvt.f32.s32 %v2012_v26  ;;  %v722_v18 = vcvt.f32.s32 %v2014_v27 }
 0x22d   : > { %705 = vmin.xlane.f32.xlu1 %v704_v56  ;;  %719 = vmin.xlane.f32.xlu0 %v718_v22  ;;  %v625_v22 = vshll.u32 %v624_v41, 16 }
 0x22e   : > { %v2021_v54 = vpop.xlane.xlu1 %729  ;;  %v2023_v24 = vpop.xlane.xlu0 %743 }
 0x22f   : > { %vm731_vm0 = vcmp.eq.f32.partialorder %v1892_v48, %v2021_v54  ;;  %vm745_vm2 = vcmp.eq.f32.partialorder %v1894_v30, %v2023_v24  ;;  %v582_v30 = vcvt.f32.s32 %v1952_v47  ;;  %v597_v47 = vshll.u32 %v596_v58, 16 }
 0x230   : > { %v732_v20 = vsel %vm731_vm0, %v727_v25, inf  ;;  %v746_v21 = vsel %vm745_vm2, %v741_v34, inf  ;;  %v681_v58 = vshll.u32 %v680_v62, 16  ;;  %v736_v26 = vcvt.f32.s32 %v2021_v54 }
 0x231   : > { %733 = vmin.xlane.f32.xlu1 %v732_v20  ;;  %747 = vmin.xlane.f32.xlu0 %v746_v21  ;;  %v750_v27 = vcvt.f32.s32 %v2023_v24 }
 0x232   : > { %v2029_v37 = vpop.xlane.xlu1 %757 }
 0x233   : > { %vm759_vm3 = vcmp.eq.f32.partialorder %v1902_v35, %v2029_v37  ;;  %v583_v35 = vshll.u32 %v582_v30, 16  ;;  %v764_v54 = vcvt.f32.s32 %v2029_v37 }
 0x234   : > { %v760_v31 = vsel %vm759_vm3, %v755_v63, inf }
 0x235   : > { %761 = vmin.xlane.f32.xlu1 %v760_v31 }
 0x2a2   : > { %v552_v48 = vpop.xlane.xlu0 %551 }
 0x2a3   : > { %v553_v46 = vcvt.f32.s32 %v552_v48 }
 0x2a5   : > { %v556_v50 = vadd.s32 %v555_v33, %v553_v46 }
 0x2a6   : > { %v566_v19 = vpop.xlane.xlu1 %565  ;;  %v580_v49 = vpop.xlane.xlu0 %579 }
 0x2a7   : > { %v567_v42 = vcvt.f32.s32 %v566_v19  ;;  %v581_v45 = vcvt.f32.s32 %v580_v49  ;;  %vm767_vm4 = vcmp.eq.s32.totalorder %v1780_v51, %v556_v50 }
 0x2a8   : > { %1392 = vmatprep.mubr.msk.f32.mxu0 %vm767_vm4, %v1570_v40 }
 0x2a9   : > { %v570_v28 = vadd.s32 %v569_v53, %v567_v42  ;;  %v584_v60 = vadd.s32 %v583_v35, %v581_v45 }
 0x2aa   : > { %v594_v0 = vpop.xlane.xlu1 %593  ;;  %v608_v38 = vpop.xlane.xlu0 %607 }
 0x2ab   : > { %vm768_vm5 = vcmp.eq.s32.totalorder %v1780_v51, %v570_v28  ;;  %v595_v17 = vcvt.f32.s32 %v594_v0  ;;  %v609_v39 = vcvt.f32.s32 %v608_v38  ;;  %vm769_vm6 = vcmp.eq.s32.totalorder %v1780_v51, %v584_v60 }
 0x2ac   : > { %1393 = vmatmul.mubr.msk.f32.vlgmr.msra.gmra.mrb[16].mxu0 %vm768_vm5, %v1570_v40  ;;  %v709_v60 = vshll.u32 %v708_v57, 16  ;;  %vm1072_vm5 = vcmask 7168  }
 0x2ad   : > { %v598_v55 = vadd.s32 %v597_v47, %v595_v17  ;;  %v612_v56 = vadd.s32 %v611_v61, %v609_v39  ;;  %1395 = vmatprep.mubr.msk.f32.mxu0 %vm769_vm6, %v1570_v40  ;;  %v723_v47 = vshll.u32 %v722_v18, 16  ;;  %v737_v39 = vshll.u32 %v736_v26, 16 }
 0x2ae   : > { %v622_v25 = vpop.xlane.xlu1 %621  ;;  %v636_v34 = vpop.xlane.xlu0 %635 }
 0x2af   : > { %v623_v20 = vcvt.f32.s32 %v622_v25  ;;  %v637_v21 = vcvt.f32.s32 %v636_v34  ;;  %vm770_vm7 = vcmp.eq.s32.totalorder %v1780_v51, %v598_v55  ;;  %vm771_vm8 = vcmp.eq.s32.totalorder %v1780_v51, %v612_v56 }
 0x2b0   : > { %1396 = vmatmul.mubr.msk.f32.gmra.mrb[18].mxu0 %vm770_vm7, %v1570_v40  ;;  %v751_v55 = vshll.u32 %v750_v27, 16  ;;  %v765_v34 = vshll.u32 %v764_v54, 16 }
 0x2b1   : > { %v626_v63 = vadd.s32 %v625_v22, %v623_v20  ;;  %1398 = vmatprep.mubr.msk.f32.mxu0 %vm771_vm8, %v1570_v40  ;;  %v640_v31 = vadd.s32 %v639_v23, %v637_v21 }
 0x2b2   : > { %v650_v48 = vpop.xlane.xlu1 %649  ;;  %v664_v33 = vpop.xlane.xlu0 %663 }
 0x2b3   : > { %v651_v30 = vcvt.f32.s32 %v650_v48  ;;  %v665_v46 = vcvt.f32.s32 %v664_v33  ;;  %vm772_vm9 = vcmp.eq.s32.totalorder %v1780_v51, %v626_v63  ;;  %vm773_vm10 = vcmp.eq.s32.totalorder %v1780_v51, %v640_v31 }
 0x2b4   : > { %1399 = vmatmul.mubr.msk.f32.gmra.mrb[20].mxu0 %vm772_vm9, %v1570_v40  ;;  %1401 = vmatprep.mubr.msk.f32.mxu1 %vm773_vm10, %v1570_v40 }
 0x2b5   : > { %v654_v50 = vadd.s32 %v653_v44, %v651_v30  ;;  %v668_v53 = vadd.s32 %v667_v32, %v665_v46 }
 0x2b6   : > { %v678_v19 = vpop.xlane.xlu1 %677  ;;  %v692_v49 = vpop.xlane.xlu0 %691 }
 0x2b7   : > { %v679_v35 = vcvt.f32.s32 %v678_v19  ;;  %v693_v42 = vcvt.f32.s32 %v692_v49  ;;  %vm774_vm11 = vcmp.eq.s32.totalorder %v1780_v51, %v654_v50  ;;  %vm775_vm12 = vcmp.eq.s32.totalorder %v1780_v51, %v668_v53 }
 0x2b8   : > { %1402 = vmatmul.mubr.msk.f32.vlgmr.msra.gmra.mrb[0].mxu1 %vm774_vm11, %v1570_v40 }
 0x2b9   : > { %v682_v45 = vadd.s32 %v681_v58, %v679_v35  ;;  %v696_v28 = vadd.s32 %v695_v59, %v693_v42  ;;  %1404 = vmatprep.mubr.msk.f32.mxu1 %vm775_vm12, %v1570_v40 }
 0x2ba   : > { %v706_v61 = vpop.xlane.xlu1 %705  ;;  %v720_v41 = vpop.xlane.xlu0 %719 }
 0x2bb   : > { %v707_v29 = vcvt.f32.s32 %v706_v61  ;;  %v721_v0 = vcvt.f32.s32 %v720_v41  ;;  %vm776_vm13 = vcmp.eq.s32.totalorder %v1780_v51, %v682_v45  ;;  %vm777_vm14 = vcmp.eq.s32.totalorder %v1780_v51, %v696_v28 }
 0x2bc   : > { %1405 = vmatmul.mubr.msk.f32.gmra.mrb[2].mxu1 %vm776_vm13, %v1570_v40 }
 0x2bd   : > { %v710_v38 = vadd.s32 %v709_v60, %v707_v29  ;;  %v724_v17 = vadd.s32 %v723_v47, %v721_v0  ;;  %1407 = vmatprep.mubr.msk.f32.mxu1 %vm777_vm14, %v1570_v40 }
 0x2be   : > { %v734_v56 = vpop.xlane.xlu1 %733  ;;  %v748_v24 = vpop.xlane.xlu0 %747 }
 0x2bf   : > { %v735_v22 = vcvt.f32.s32 %v734_v56  ;;  %v749_v23 = vcvt.f32.s32 %v748_v24  ;;  %vm778_vm15 = vcmp.eq.s32.totalorder %v1780_v51, %v710_v38  ;;  %vm779_vm0 = vcmp.eq.s32.totalorder %v1780_v51, %v724_v17 }
 0x2c0   : > { %1408 = vmatmul.mubr.msk.f32.gmra.mrb[4].mxu1 %vm778_vm15, %v1570_v40 }
 0x2c1   : > { %v738_v36 = vadd.s32 %v737_v39, %v735_v22  ;;  %v752_v52 = vadd.s32 %v751_v55, %v749_v23  ;;  %1410 = vmatprep.mubr.msk.f32.mxu1 %vm779_vm0, %v1570_v40 }
 0x2c2   : > { %v762_v25 = vpop.xlane.xlu1 %761 }
 0x2c3   : > { %v763_v20 = vcvt.f32.s32 %v762_v25  ;;  %vm780_vm2 = vcmp.eq.s32.totalorder %v1780_v51, %v738_v36  ;;  %vm781_vm3 = vcmp.eq.s32.totalorder %v1780_v51, %v752_v52 }
 0x2c4   : > { %1411 = vmatmul.mubr.msk.f32.gmra.mrb[6].mxu1 %vm780_vm2, %v1570_v40 }
 0x2c5   : > { %v766_v37 = vadd.s32 %v765_v34, %v763_v20  ;;  %1413 = vmatprep.mubr.msk.f32.mxu1 %vm781_vm3, %v1570_v40 }
 0x2c7   : > { %vm782_vm4 = vcmp.eq.s32.totalorder %v1780_v51, %v766_v37 }
 0x2c8   : > { %1414 = vmatmul.mubr.msk.f32.gmra.mrb[8].mxu1 %vm782_vm4, %v1570_v40 }
 0x37f   : > { %v1394_v21 = vpop.f32.mrb[16].mxu0 }
 0x380   : > { %977 = vst.msk [vmem:[%s2086_s26 + $0x8] sm:$0xff] %vm256_vm1, %v1394_v21  ;;  %v993_v63 = vsub.f32 %v1394_v21, %v1668_v2  ;;  %v897_v31 = vpop.f32.mrb[17].mxu0 }
 0x381   : > { %976 = vst.msk [vmem:[%s2086_s26] sm:$0xff] %vm256_vm1, %v897_v31  ;;  %v992_v51 = vsub.f32 %v897_v31, %v1665_v1 }
 0x382   : > { %v1009_v40 = vmul.f32 %v993_v63, %v993_v63 }
 0x383   : > { %v1008_v44 = vmul.f32 %v992_v51, %v992_v51  ;;  %v1397_v32 = vpop.f32.mrb[18].mxu0 }
 0x384   : > { %979 = vst.msk [vmem:[%s2086_s26 + $0x18] sm:$0xff] %vm256_vm1, %v1397_v32  ;;  %v995_v62 = vsub.f32 %v1397_v32, %v1680_v4  ;;  %v907_v43 = vpop.f32.mrb[19].mxu0  ;;  %v1027_v48 = vsel %vm256_vm1, %v1009_v40, 0.0 }
 0x385   : > { %978 = vst.msk [vmem:[%s2086_s26 + $0x10] sm:$0xff] %vm256_vm1, %v907_v43  ;;  %v994_v2 = vsub.f32 %v907_v43, %v1671_v3  ;;  %1028 = vadd.xlane.f32.xlu1 %v1027_v48  ;;  %v1024_v33 = vsel %vm256_vm1, %v1008_v44, 0.0 }
 0x386   : > { %v1011_v1 = vmul.f32 %v995_v62, %v995_v62  ;;  %1025 = vadd.xlane.f32.xlu0 %v1024_v33 }
 0x387   : > { %v1010_v30 = vmul.f32 %v994_v2, %v994_v2  ;;  %v1400_v46 = vpop.f32.mrb[20].mxu0 }
 0x388   : > { %981 = vst.msk [vmem:[%s2086_s26 + $0x28] sm:$0xff] %vm256_vm1, %v1400_v46  ;;  %v997_v4 = vsub.f32 %v1400_v46, %v1690_v6  ;;  %v917_v50 = vpop.f32.mrb[21].mxu0  ;;  %v1033_v53 = vsel %vm256_vm1, %v1011_v1, 0.0 }
 0x389   : > { %980 = vst.msk [vmem:[%s2086_s26 + $0x20] sm:$0xff] %vm256_vm1, %v917_v50  ;;  %v996_v3 = vsub.f32 %v917_v50, %v1683_v5  ;;  %1034 = vadd.xlane.f32.xlu1 %v1033_v53  ;;  %v1030_v58 = vsel %vm256_vm1, %v1010_v30, 0.0 }
 0x38a   : > { %v1013_v59 = vmul.f32 %v997_v4, %v997_v4  ;;  %1031 = vadd.xlane.f32.xlu0 %v1030_v58 }
 0x38b   : > { %v1012_v57 = vmul.f32 %v996_v3, %v996_v3  ;;  %v1403_v18 = vpop.f32.mrb[0].mxu1 }
 0x38c   : > { %983 = vst.msk [vmem:[%s2086_s26 + $0x38] sm:$0xff] %vm256_vm1, %v1403_v18  ;;  %v999_v6 = vsub.f32 %v1403_v18, %v1700_v8  ;;  %v927_v19 = vpop.f32.mrb[1].mxu1  ;;  %v1039_v49 = vsel %vm256_vm1, %v1013_v59, 0.0 }
 0x38d   : > { %982 = vst.msk [vmem:[%s2086_s26 + $0x30] sm:$0xff] %vm256_vm1, %v927_v19  ;;  %v998_v5 = vsub.f32 %v927_v19, %v1693_v7  ;;  %1040 = vadd.xlane.f32.xlu1 %v1039_v49  ;;  %v1036_v35 = vsel %vm256_vm1, %v1012_v57, 0.0 }
 0x38e   : > { %v1015_v42 = vmul.f32 %v999_v6, %v999_v6  ;;  %1037 = vadd.xlane.f32.xlu0 %v1036_v35 }
 0x38f   : > { %v1014_v45 = vmul.f32 %v998_v5, %v998_v5  ;;  %v1406_v28 = vpop.f32.mrb[2].mxu1 }
 0x390   : > { %985 = vst.msk [vmem:[%s2086_s26 + $0x48] sm:$0xff] %vm256_vm1, %v1406_v28  ;;  %v1001_v8 = vsub.f32 %v1406_v28, %v1710_v10  ;;  %v937_v60 = vpop.f32.mrb[3].mxu1  ;;  %v1045_v47 = vsel %vm256_vm1, %v1015_v42, 0.0 }
 0x391   : > { %984 = vst.msk [vmem:[%s2086_s26 + $0x40] sm:$0xff] %vm256_vm1, %v937_v60  ;;  %v1000_v7 = vsub.f32 %v937_v60, %v1703_v9  ;;  %1046 = vadd.xlane.f32.xlu1 %v1045_v47  ;;  %v1042_v26 = vsel %vm256_vm1, %v1014_v45, 0.0 }
 0x392   : > { %v1017_v27 = vmul.f32 %v1001_v8, %v1001_v8  ;;  %1043 = vadd.xlane.f32.xlu0 %v1042_v26 }
 0x393   : > { %v1016_v61 = vmul.f32 %v1000_v7, %v1000_v7  ;;  %v1409_v41 = vpop.f32.mrb[4].mxu1 }
 0x394   : > { %987 = vst.msk [vmem:[%s2086_s26 + $0x58] sm:$0xff] %vm256_vm1, %v1409_v41  ;;  %v1003_v10 = vsub.f32 %v1409_v41, %v1720_v12  ;;  %v947_v29 = vpop.f32.mrb[5].mxu1  ;;  %v1051_v0 = vsel %vm256_vm1, %v1017_v27, 0.0 }
 0x395   : > { %986 = vst.msk [vmem:[%s2086_s26 + $0x50] sm:$0xff] %vm256_vm1, %v947_v29  ;;  %v1002_v9 = vsub.f32 %v947_v29, %v1713_v11  ;;  %1052 = vadd.xlane.f32.xlu1 %v1051_v0  ;;  %v1048_v38 = vsel %vm256_vm1, %v1016_v61, 0.0 }
 0x396   : > { %v1019_v17 = vmul.f32 %v1003_v10, %v1003_v10  ;;  %1049 = vadd.xlane.f32.xlu0 %v1048_v38 }
 0x397   : > { %v1018_v39 = vmul.f32 %v1002_v9, %v1002_v9  ;;  %v1412_v55 = vpop.f32.mrb[6].mxu1 }
 0x398   : > { %989 = vst.msk [vmem:[%s2086_s26 + $0x68] sm:$0xff] %vm256_vm1, %v1412_v55  ;;  %v1005_v12 = vsub.f32 %v1412_v55, %v1730_v14  ;;  %v957_v54 = vpop.f32.mrb[7].mxu1  ;;  %v1057_v56 = vsel %vm256_vm1, %v1019_v17, 0.0 }
 0x399   : > { %988 = vst.msk [vmem:[%s2086_s26 + $0x60] sm:$0xff] %vm256_vm1, %v957_v54  ;;  %v1004_v11 = vsub.f32 %v957_v54, %v1723_v13  ;;  %1058 = vadd.xlane.f32.xlu1 %v1057_v56  ;;  %v1054_v24 = vsel %vm256_vm1, %v1018_v39, 0.0 }
 0x39a   : > { %v1021_v22 = vmul.f32 %v1005_v12, %v1005_v12  ;;  %1055 = vadd.xlane.f32.xlu0 %v1054_v24 }
 0x39b   : > { %v1020_v23 = vmul.f32 %v1004_v11, %v1004_v11  ;;  %v1415_v36 = vpop.f32.mrb[8].mxu1 }
 0x39c   : > { %991 = vst.msk [vmem:[%s2086_s26 + $0x78] sm:$0xff] %vm256_vm1, %v1415_v36  ;;  %v1007_v52 = vsub.f32 %v1415_v36, %v1740_v16  ;;  %v967_v25 = vpop.f32.mrb[9].mxu1  ;;  %v1063_v14 = vsel %vm256_vm1, %v1021_v22, 0.0 }
 0x39d   : > { %990 = vst.msk [vmem:[%s2086_s26 + $0x70] sm:$0xff] %vm256_vm1, %v967_v25  ;;  %v1006_v34 = vsub.f32 %v967_v25, %v1733_v15  ;;  %1064 = vadd.xlane.f32.xlu1 %v1063_v14  ;;  %v1060_v13 = vsel %vm256_vm1, %v1020_v23, 0.0 }
 0x39e   : > { %v1023_v20 = vmul.f32 %v1007_v52, %v1007_v52  ;;  %1061 = vadd.xlane.f32.xlu0 %v1060_v13 }
 0x39f   : > { %v1022_v37 = vmul.f32 %v1006_v34, %v1006_v34 }
 0x3a0   : > { %v1069_v21 = vsel %vm256_vm1, %v1023_v20, 0.0 }
 0x3a1   : > { %1070 = vadd.xlane.f32.xlu1 %v1069_v21  ;;  %v1066_v63 = vsel %vm256_vm1, %v1022_v37, 0.0 }
 0x3a2   : > { %1067 = vadd.xlane.f32.xlu0 %v1066_v63 }
 0x412   : > { %v1029_v16 = vpop.xlane.xlu1 %1028 }
 0x413   : > { %v1026_v31 = vpop.xlane.xlu0 %1025  ;;  %v1074_v51 = vsel %vm1072_vm5, %v1029_v16, 0.0 }
 0x414   : > { %v1073_v40 = vsel %vm1072_vm5, %v1026_v31, 0.0 }
 0x415   : > { %v1075_v44 = vadd.f32 %v1074_v51, %v1073_v40 }
 0x416   : > { %v1035_v15 = vpop.xlane.xlu1 %1034 }
 0x417   : > { %v1032_v32 = vpop.xlane.xlu0 %1031  ;;  %v1078_v48 = vsel %vm1072_vm5, %v1035_v15, 0.0 }
 0x418   : > { %v1076_v62 = vsel %vm1072_vm5, %v1032_v32, 0.0 }
 0x419   : > { %v1077_v43 = vadd.f32 %v1076_v62, %v1075_v44 }
 0x41a   : > { %v1041_v2 = vpop.xlane.xlu1 %1040 }
 0x41b   : > { %v1079_v33 = vadd.f32 %v1078_v48, %v1077_v43  ;;  %v1038_v1 = vpop.xlane.xlu0 %1037  ;;  %v1082_v4 = vsel %vm1072_vm5, %v1041_v2, 0.0 }
 0x41c   : > { %v1080_v30 = vsel %vm1072_vm5, %v1038_v1, 0.0 }
 0x41d   : > { %v1081_v46 = vadd.f32 %v1080_v30, %v1079_v33 }
 0x41e   : > { %v1047_v50 = vpop.xlane.xlu1 %1046 }
 0x41f   : > { %v1083_v53 = vadd.f32 %v1082_v4, %v1081_v46  ;;  %v1044_v3 = vpop.xlane.xlu0 %1043  ;;  %v1086_v57 = vsel %vm1072_vm5, %v1047_v50, 0.0 }
 0x420   : > { %v1084_v58 = vsel %vm1072_vm5, %v1044_v3, 0.0 }
 0x421   : > { %v1085_v59 = vadd.f32 %v1084_v58, %v1083_v53 }
 0x422   : > { %v1053_v18 = vpop.xlane.xlu1 %1052 }
 0x423   : > { %v1087_v6 = vadd.f32 %v1086_v57, %v1085_v59  ;;  %v1050_v19 = vpop.xlane.xlu0 %1049  ;;  %v1090_v35 = vsel %vm1072_vm5, %v1053_v18, 0.0 }
 0x424   : > { %v1088_v49 = vsel %vm1072_vm5, %v1050_v19, 0.0 }
 0x425   : > { %v1089_v5 = vadd.f32 %v1088_v49, %v1087_v6 }
 0x426   : > { %v1059_v42 = vpop.xlane.xlu1 %1058 }
 0x427   : > { %v1091_v45 = vadd.f32 %v1090_v35, %v1089_v5  ;;  %v1056_v28 = vpop.xlane.xlu0 %1055  ;;  %v1094_v47 = vsel %vm1072_vm5, %v1059_v42, 0.0 }
 0x428   : > { %v1092_v8 = vsel %vm1072_vm5, %v1056_v28, 0.0 }
 0x429   : > { %v1093_v60 = vadd.f32 %v1092_v8, %v1091_v45 }
 0x42a   : > { %v1065_v7 = vpop.xlane.xlu1 %1064 }
 0x42b   : > { %v1095_v26 = vadd.f32 %v1094_v47, %v1093_v60  ;;  %v1062_v27 = vpop.xlane.xlu0 %1061  ;;  %v1098_v10 = vsel %vm1072_vm5, %v1065_v7, 0.0 }
 0x42c   : > { %v1096_v61 = vsel %vm1072_vm5, %v1062_v27, 0.0 }
 0x42d   : > { %v1097_v41 = vadd.f32 %v1096_v61, %v1095_v26 }
 0x42e   : > { %v1071_v29 = vpop.xlane.xlu1 %1070 }
 0x42f   : > { %v1099_v0 = vadd.f32 %v1098_v10, %v1097_v41  ;;  %v1068_v9 = vpop.xlane.xlu0 %1067  ;;  %v1102_v39 = vsel %vm1072_vm5, %v1071_v29, 0.0 }
 0x430   : > { %v1100_v38 = vsel %vm1072_vm5, %v1068_v9, 0.0 }
 0x431   : > { %v1101_v17 = vadd.f32 %v1100_v38, %v1099_v0 }
 0x433   : > { %v1103_v55 = vadd.f32 %v1102_v39, %v1101_v17 }
 0x435   : > { %1104 = vadd.xlane.f32.xlu0 %v1103_v55 }
 0x4c2   : > { %v1105_v12 = vpop.xlane.xlu0 %1104 }
 0x4c3   : > { %v1106_v54 = vrot.slane %v1105_v12, 4 }
 0x4c5   : > { %v1107_v56 = vadd.f32 %v1106_v54, %v1105_v12 }
 0x4c7   : > { %v1108_v11 = vrot.slane %v1107_v56, 2 }
 0x4c9   : > { %v1109_v24 = vadd.f32 %v1108_v11, %v1107_v56 }
 0x4cb   : > { %v1110_v22 = vrot.slane %v1109_v24, 1 }
 0x4cd   : > { %v1111_v23 = vadd.f32 %v1110_v22, %v1109_v24 }
 0x4cf   : > { %1464 = vpush %v1111_v23 }
 0x500   : > { %s1465_s10 = spop %1464 }
 0x501   : > { %v1113_v36 = vstv %s1465_s10 }
 0x502   : > { %1114 = vst [vmem:[%s226_s30] sm:$0xff] %v1113_v36 }
 0x503   : > { %1519 = shalt.err (!%p1516_p3)
}
 0x504   : > { %s1520_s23 = scalar_lea.hbm %s2175_s13, 128  ;;  %s1524_s7 = scalar_lea.hbm %s2220_s5, 512 }
 0x505   : > { %p1521_p4 = scmp.ne.s32.totalorder %s2175_s13, %s1520_s23  ;;  %p1525_p9 = scmp.lt.u32.totalorder %s2175_s13, %s2220_s5 }
 0x506   : > { %p1526_p10 = scmp.lt.u32.totalorder %s1524_s7, %s1520_s23  ;;  %p1528_p12 = scmp.lt.u32.totalorder %s1520_s23, %s2175_s13 }
 0x507   : > { %p1522_p7 = pnand %p1521_p4, %p1640_p5 }
 0x508   : > { %p1527_p11 = por %p1526_p10, %p1525_p9 }
 0x509   : > { %p1523_p8 = pneg %p1522_p7 }
 0x50a   : > { %p1529_p13 = por %p1528_p12, %p1527_p11 }
 0x50c   : > { %p1530_p0 = pnand %p1529_p13, %p1523_p8 }
 0x50e   : > { %1533 = shalt.err (!%p1530_p0)
}
 0x50f   : > { %1466 = dma.vmem_to_hbm [thread:$0]  (%p1640_p5), %s2170_s6, 128, %s2175_s13, %s1121_s14  }
 0x510 PF: > { %p1472_p1 = scmp.ge.s32.totalorder %s1568_s21, 2  ;;  %s1158_s9 = sand.u32 1, %s1556_s18  }
 0x511   : > { %s1159_s10 = scalar_lea.sflag [#allocation3], %s1158_s9 }
 0x512   : > { %p1469_p2 = pnand %p1472_p1, %p1644_p6 }
 0x514   : > { %1551 = dma.done.wait (!%p1469_p2), %s1159_s10, 128  }
 0x515   : > { %1553 = vsyncadd (!%p1469_p2), %s1159_s10, 4294967168  ;;  %p16_p3 = scmp.ge.s32.totalorder %s1627_s24, 6   ;;  %s2223_s18 = smov %s1560_s19 }
 0x516   : > { %s2224_s19 = smov %s1564_s20  ;;  %s2225_s20 = smov %s1638_s27 }
 0x517   : > { %s2226_s21 = smov %s1627_s24  ;;  %18 = sbr.rel (!%p16_p3) target bundleno = 3 (0x3), region = 83 }
 0x51e   :  { %1164 = vsyncpa [#allocation3], 1 }
 0x51f   :  { %1166 = vsyncpa [#allocation3 + $0x1], 1 }

</bundles_post_ra>
